<compile_context>
chip_gen: v7x
topology: tpu7x:2x2x1
jax: 0.10.0
libtpu: 0.0.40
codegen_flags: <defaults>
</compile_context>

<pallas_src>
import jax
import jax.numpy as jnp
from jax.experimental import pallas as pl
from jax.experimental.pallas import tpu as pltpu

WORDS_DIM = 300                      # embedding width (lane axis of the matmul)
SENT_LEN = 36                        # sentence_length in the PyTorch module
MAX_PAD = 4                          # largest conv padding among the three convs
H_PAD = 48                           # staged rows: >= MAX_PAD + U_FRAME, multiple of 16
U_FRAME = 40                         # largest conv output length: 36 + 2*4 - 5 + 1
OUT_CH = 6                           # channels per conv
KERNEL_SPECS = ((3, 2), (4, 3), (5, 4))  # (kernel_height, conv_padding)
NUM_NETS = 2
NET_FEATS = 3 * OUT_CH               # 18 pooled features per net
FEAT = NUM_NETS * NET_FEATS          # 36 interleaved feature lanes
NUM_SHIFTS = MAX_PAD + 1             # 5 shift groups
B_TILE = 64                          # batch tile; bf16 footprint ~12 MiB -> fits v5e/v6e/v7x

assert MAX_PAD + SENT_LEN <= H_PAD
assert MAX_PAD + U_FRAME <= H_PAD
assert H_PAD % 16 == 0               # keeps bf16 reshapes layout-preserving


def fused_cnn_kernel(x1_ref, x2_ref, wa_ref, wb_ref, bias_ref, mask_ref,
                     out_ref, xa_ref, xb_ref):
    """Both Nets (CNN1 on x1, CNN2 on x2) for one batch tile.

    x1_ref/x2_ref : (bt, L, 300) bf16   un-padded sentence tiles
    wa_ref/wb_ref : (300, 180)   bf16   shift-grouped weights (net-1 / net-2 lanes)
    bias_ref      : (1, 36)      f32    biases in [net|conv|channel] lane order
    mask_ref      : (40, 36)     f32    0 for valid rows, -1e30 for phantom rows
    out_ref       : (bt, 36)     f32    pooled features, lanes 0:18 net1, 18:36 net2
    xa_ref/xb_ref : (bt, 48, 300) bf16  zero-padded staging buffers (scratch)
    """
    bt, L, _ = x1_ref.shape

    # Stage each net's sentences into a 48-row zero-padded bf16 buffer.
    # (Pad rows are rewritten every step on purpose: scratches are per-core
    #  under "parallel" megacore partitioning, so a program_id==0 hoist is
    #  unsafe; the re-zero is only ~0.9 MiB of VMEM stores per step.)
    zpre = jnp.zeros((bt, MAX_PAD, WORDS_DIM), jnp.bfloat16)
    zpost = jnp.zeros((bt, H_PAD - MAX_PAD - L, WORDS_DIM), jnp.bfloat16)
    xa_ref[:, 0:MAX_PAD, :] = zpre
    xa_ref[:, MAX_PAD + L:H_PAD, :] = zpost
    xa_ref[:, MAX_PAD:MAX_PAD + L, :] = x1_ref[...]
    xb_ref[:, 0:MAX_PAD, :] = zpre
    xb_ref[:, MAX_PAD + L:H_PAD, :] = zpost
    xb_ref[:, MAX_PAD:MAX_PAD + L, :] = x2_ref[...]

    # Two wide bf16 MXU matmuls (one per net); wa/wb place each net's results in
    # disjoint 18-lane halves of every 36-lane shift group, so the sum holds
    # both nets interleaved with no wasted accumulator lanes.
    xa = xa_ref[...].reshape(bt * H_PAD, WORDS_DIM)     # 48 % 16 == 0 -> layout-preserving
    xb = xb_ref[...].reshape(bt * H_PAD, WORDS_DIM)
    p = (jnp.dot(xa, wa_ref[...], preferred_element_type=jnp.float32) +
         jnp.dot(xb, wb_ref[...], preferred_element_type=jnp.float32))
    p = p.reshape(bt, H_PAD, NUM_SHIFTS * FEAT)         # (bt, 48, 180)

    # Shift-grouped accumulation: conv_out[u, m] = sum_s p[u + s, s*36 + m].
    # Five full-width (36-lane) adds build all 2 nets x 3 convs x 6 channels.
    acc = p[:, 0:U_FRAME, 0:FEAT]
    for s in range(1, NUM_SHIFTS):
        acc = acc + p[:, s:s + U_FRAME, s * FEAT:(s + 1) * FEAT]

    # Bias, additive phantom-row mask (rows u >= h_out for that conv), global
    # max-pool over the sequence axis, then ReLU (max and ReLU commute).
    z = acc + bias_ref[...] + mask_ref[...]
    out_ref[...] = jnp.maximum(jnp.max(z, axis=1), 0.0)


def pack_params(params1, params2):
    """Repack both nets' conv params into shift-grouped matmul weights.

    Returns:
      wa, wb   : (300, 180) bf16 — 5 shift groups x 36 lanes; net-1 weights in
                 lanes 0:18 of each group (wa), net-2 weights in lanes 18:36 (wb).
      bias     : (1, 36) f32 in [net|conv|channel] lane order.
      mask_add : (40, 36) f32, 0 for u < h_out(conv) else -1e30.
    """
    groups_a, groups_b = [], []
    zero6 = jnp.zeros((WORDS_DIM, OUT_CH), jnp.float32)
    zero18 = jnp.zeros((WORDS_DIM, NET_FEATS), jnp.float32)
    for s in range(NUM_SHIFTS):
        cols_a, cols_b = [], []
        for params, cols in ((params1, cols_a), (params2, cols_b)):
            for (w, _), (k, pad) in zip(params, KERNEL_SPECS):
                dk = s - (MAX_PAD - pad)
                if 0 <= dk < k:
                    cols.append(jnp.transpose(w[:, 0, dk, :]))   # (300, 6)
                else:
                    cols.append(zero6)
        groups_a.append(jnp.concatenate(cols_a + [zero18], axis=1))   # net-1 -> lanes 0:18
        groups_b.append(jnp.concatenate([zero18] + cols_b, axis=1))   # net-2 -> lanes 18:36
    wa = jnp.concatenate(groups_a, axis=1).astype(jnp.bfloat16)       # (300, 180)
    wb = jnp.concatenate(groups_b, axis=1).astype(jnp.bfloat16)

    bias = jnp.concatenate([b for (_, b) in params1] + [b for (_, b) in params2])
    bias = bias.reshape(1, FEAT).astype(jnp.float32)

    hout = []
    for _ in range(NUM_NETS):
        for (k, pad) in KERNEL_SPECS:
            hout += [SENT_LEN + 2 * pad - k + 1] * OUT_CH              # 38 / 39 / 40
    hout = jnp.asarray(hout, jnp.int32)                                # (36,)
    u = jnp.arange(U_FRAME, dtype=jnp.int32)[:, None]
    mask_add = jnp.where(u < hout[None, :], 0.0, -1e30).astype(jnp.float32)
    return wa, wb, bias, mask_add


def _choose_batch_tile(B):
    """Batch tile that is a multiple of 8 (or the whole batch) and gives >=2
    grid steps when possible, so both v7x TensorCores get work."""
    if B > B_TILE:
        return B_TILE
    half = pl.cdiv(B, 2)
    half_up = ((half + 7) // 8) * 8
    return half_up if half_up < B else B


def attr_sum_simple_cnn_forward(x1, x2, params1, params2):
    """x1, x2: (B, L, 300) with 1 <= L <= 36.  Returns two (B, 18) feature tensors."""
    B, L, D = x1.shape
    assert x2.shape == (B, L, D) and D == WORDS_DIM and 1 <= L <= SENT_LEN

    wa, wb, bias, mask_add = pack_params(params1, params2)

    # bf16 inputs: the kernel is HBM-bound, this halves the dominant cost.
    x1 = x1.astype(jnp.bfloat16)
    x2 = x2.astype(jnp.bfloat16)

    bt = _choose_batch_tile(B)
    n_blocks = pl.cdiv(B, bt)
    b_padded = n_blocks * bt
    if b_padded != B:
        pad_n = b_padded - B
        x1 = jnp.pad(x1, ((0, pad_n), (0, 0), (0, 0)))
        x2 = jnp.pad(x2, ((0, pad_n), (0, 0), (0, 0)))

    grid_spec = pltpu.PrefetchScalarGridSpec(
        num_scalar_prefetch=0,
        grid=(n_blocks,),
        in_specs=[
            pl.BlockSpec((bt, L, WORDS_DIM), lambda i: (i, 0, 0)),
            pl.BlockSpec((bt, L, WORDS_DIM), lambda i: (i, 0, 0)),
            pl.BlockSpec((WORDS_DIM, NUM_SHIFTS * FEAT), lambda i: (0, 0)),
            pl.BlockSpec((WORDS_DIM, NUM_SHIFTS * FEAT), lambda i: (0, 0)),
            pl.BlockSpec((1, FEAT), lambda i: (0, 0)),
            pl.BlockSpec((U_FRAME, FEAT), lambda i: (0, 0)),
        ],
        out_specs=pl.BlockSpec((bt, FEAT), lambda i: (i, 0)),
        scratch_shapes=[
            pltpu.VMEM((bt, H_PAD, WORDS_DIM), jnp.bfloat16),
            pltpu.VMEM((bt, H_PAD, WORDS_DIM), jnp.bfloat16),
        ],
    )
    out = pl.pallas_call(
        fused_cnn_kernel,
        out_shape=jax.ShapeDtypeStruct((b_padded, FEAT), jnp.float32),
        grid_spec=grid_spec,
        compiler_params=pltpu.CompilerParams(
            dimension_semantics=("parallel",),
            vmem_limit_bytes=48 << 20,
        ),
    )(x1, x2, wa, wb, bias, mask_add)
    return out[:B, :NET_FEATS], out[:B, NET_FEATS:]


def init_net_params(key):
    """PyTorch-Conv2d-style init; weights kept in NCHW layout (6, 1, k, 300), bias (6,)."""
    params = []
    for (k, _) in KERNEL_SPECS:
        key, kw, kb = jax.random.split(key, 3)
        fan_in = 1 * k * WORDS_DIM
        bound = 1.0 / (fan_in ** 0.5)
        w = jax.random.uniform(kw, (OUT_CH, 1, k, WORDS_DIM), jnp.float32, -bound, bound)
        b = jax.random.uniform(kb, (OUT_CH,), jnp.float32, -bound, bound)
        params.append((w, b))
    return params


def reference_forward(x1, x2, params1, params2):
    """Pure-JAX reference (mirrors the PyTorch module) for a correctness check."""
    def net(x, params):
        bsz, L, d = x.shape
        xp = jnp.zeros((bsz, SENT_LEN, d), x.dtype).at[:, :L, :].set(x)
        feats = []
        for (w, b), (k, pad) in zip(params, KERNEL_SPECS):
            xpp = jnp.pad(xp, ((0, 0), (pad, pad), (0, 0)))
            h_out = SENT_LEN + 2 * pad - k + 1
            out = jnp.broadcast_to(b[None, None, :], (bsz, h_out, OUT_CH))
            for dk in range(k):
                out = out + jnp.einsum(
                    'bid,cd->bic', xpp[:, dk:dk + h_out, :], w[:, 0, dk, :],
                    precision=jax.lax.Precision.HIGHEST)
            feats.append(jnp.max(jnp.maximum(out, 0.0), axis=1))
        return jnp.concatenate(feats, axis=1)
    return net(x1, params1), net(x2, params2)


if __name__ == "__main__":
    key = jax.random.PRNGKey(0)
    kx1, kx2, kp1, kp2 = jax.random.split(key, 4)
    B, L = 2, 20                                  # seq length <= 36, embedding dim fixed at 300
    x1 = jax.random.normal(kx1, (B, L, WORDS_DIM), jnp.float32)
    x2 = jax.random.normal(kx2, (B, L, WORDS_DIM), jnp.float32)
    params1 = init_net_params(kp1)
    params2 = init_net_params(kp2)

    fwd = jax.jit(attr_sum_simple_cnn_forward)
    o1, o2 = fwd(x1, x2, params1, params2)
    jax.block_until_ready((o1, o2))

    assert o1.shape == (B, NET_FEATS) and o2.shape == (B, NET_FEATS)
    assert o1.dtype == jnp.float32 and o2.dtype == jnp.float32

    r1, r2 = reference_forward(x1, x2, params1, params2)
    assert jnp.allclose(o1, r1, atol=2e-2, rtol=2e-2), float(jnp.max(jnp.abs(o1 - r1)))
    assert jnp.allclose(o2, r2, atol=2e-2, rtol=2e-2), float(jnp.max(jnp.abs(o2 - r2)))
    print("KERNEL_OK")
</pallas_src>

<mosaic_0001>
module attributes {stable_mosaic.version = 11 : i64} {
  func.func @fused_cnn_kernel(%arg0: i32, %arg1: memref<2x20x300xbf16, #tpu.memory_space<vmem>>, %arg2: memref<2x20x300xbf16, #tpu.memory_space<vmem>>, %arg3: memref<300x180xbf16, #tpu.memory_space<vmem>>, %arg4: memref<300x180xbf16, #tpu.memory_space<vmem>>, %arg5: memref<1x36xf32, #tpu.memory_space<vmem>>, %arg6: memref<40x36xf32, #tpu.memory_space<vmem>>, %arg7: memref<2x36xf32, #tpu.memory_space<vmem>>, %arg8: memref<2x48x300xbf16, #tpu.memory_space<vmem>>, %arg9: memref<2x48x300xbf16, #tpu.memory_space<vmem>>) attributes {dimension_semantics = [#tpu.dimension_semantics<parallel>], iteration_bounds = array<i64: 1>, scalar_prefetch = 0 : i64, scratch_operands = 2 : i64, tpu.core_type = #tpu.core_type<tc>, window_params = [{transform_indices = @transform_0, window_bounds = array<i64: 2, 20, 300>}, {transform_indices = @transform_1, window_bounds = array<i64: 2, 20, 300>}, {pipeline_mode = #tpu.pipeline_mode<synchronous>, transform_indices = @transform_2, window_bounds = array<i64: 300, 180>}, {pipeline_mode = #tpu.pipeline_mode<synchronous>, transform_indices = @transform_3, window_bounds = array<i64: 300, 180>}, {pipeline_mode = #tpu.pipeline_mode<synchronous>, transform_indices = @transform_4, window_bounds = array<i64: 1, 36>}, {pipeline_mode = #tpu.pipeline_mode<synchronous>, transform_indices = @transform_5, window_bounds = array<i64: 40, 36>}, {transform_indices = @transform_6, window_bounds = array<i64: 2, 36>}]} {
    %cst = arith.constant 0.000000e+00 : bf16
    %0 = vector.broadcast %cst : bf16 to vector<2x4x300xbf16>
    %cst_0 = arith.constant 0.000000e+00 : bf16
    %1 = vector.broadcast %cst_0 : bf16 to vector<2x24x300xbf16>
    %c0 = arith.constant 0 : index
    %c0_1 = arith.constant 0 : index
    %c0_2 = arith.constant 0 : index
    %2 = vector.load %arg8[%c0, %c0_1, %c0_2] : memref<2x48x300xbf16, #tpu.memory_space<vmem>>, vector<2x4x300xbf16>
    tpu.vector_store %arg8[%c0, %c0_1, %c0_2], %0 {strides = array<i32>} : memref<2x48x300xbf16, #tpu.memory_space<vmem>>, vector<2x4x300xbf16>,
    %c0_3 = arith.constant 0 : index
    %c24 = arith.constant 24 : index
    %c0_4 = arith.constant 0 : index
    %3 = vector.load %arg8[%c0_3, %c24, %c0_4] : memref<2x48x300xbf16, #tpu.memory_space<vmem>>, vector<2x24x300xbf16>
    tpu.vector_store %arg8[%c0_3, %c24, %c0_4], %1 {strides = array<i32>} : memref<2x48x300xbf16, #tpu.memory_space<vmem>>, vector<2x24x300xbf16>,
    %c0_5 = arith.constant 0 : index
    %c0_6 = arith.constant 0 : index
    %c0_7 = arith.constant 0 : index
    %4 = vector.load %arg1[%c0_5, %c0_6, %c0_7] : memref<2x20x300xbf16, #tpu.memory_space<vmem>>, vector<2x20x300xbf16>
    %c0_8 = arith.constant 0 : index
    %c4 = arith.constant 4 : index
    %c0_9 = arith.constant 0 : index
    %5 = vector.load %arg8[%c0_8, %c4, %c0_9] : memref<2x48x300xbf16, #tpu.memory_space<vmem>>, vector<2x20x300xbf16>
    tpu.vector_store %arg8[%c0_8, %c4, %c0_9], %4 {strides = array<i32>} : memref<2x48x300xbf16, #tpu.memory_space<vmem>>, vector<2x20x300xbf16>,
    %c0_10 = arith.constant 0 : index
    %c0_11 = arith.constant 0 : index
    %c0_12 = arith.constant 0 : index
    %6 = vector.load %arg9[%c0_10, %c0_11, %c0_12] : memref<2x48x300xbf16, #tpu.memory_space<vmem>>, vector<2x4x300xbf16>
    tpu.vector_store %arg9[%c0_10, %c0_11, %c0_12], %0 {strides = array<i32>} : memref<2x48x300xbf16, #tpu.memory_space<vmem>>, vector<2x4x300xbf16>,
    %c0_13 = arith.constant 0 : index
    %c24_14 = arith.constant 24 : index
    %c0_15 = arith.constant 0 : index
    %7 = vector.load %arg9[%c0_13, %c24_14, %c0_15] : memref<2x48x300xbf16, #tpu.memory_space<vmem>>, vector<2x24x300xbf16>
    tpu.vector_store %arg9[%c0_13, %c24_14, %c0_15], %1 {strides = array<i32>} : memref<2x48x300xbf16, #tpu.memory_space<vmem>>, vector<2x24x300xbf16>,
    %c0_16 = arith.constant 0 : index
    %c0_17 = arith.constant 0 : index
    %c0_18 = arith.constant 0 : index
    %8 = vector.load %arg2[%c0_16, %c0_17, %c0_18] : memref<2x20x300xbf16, #tpu.memory_space<vmem>>, vector<2x20x300xbf16>
    %c0_19 = arith.constant 0 : index
    %c4_20 = arith.constant 4 : index
    %c0_21 = arith.constant 0 : index
    %9 = vector.load %arg9[%c0_19, %c4_20, %c0_21] : memref<2x48x300xbf16, #tpu.memory_space<vmem>>, vector<2x20x300xbf16>
    tpu.vector_store %arg9[%c0_19, %c4_20, %c0_21], %8 {strides = array<i32>} : memref<2x48x300xbf16, #tpu.memory_space<vmem>>, vector<2x20x300xbf16>,
    %c0_22 = arith.constant 0 : index
    %c0_23 = arith.constant 0 : index
    %c0_24 = arith.constant 0 : index
    %10 = vector.load %arg8[%c0_22, %c0_23, %c0_24] : memref<2x48x300xbf16, #tpu.memory_space<vmem>>, vector<2x48x300xbf16>
    %11 = vector.shape_cast %10 : vector<2x48x300xbf16> to vector<96x300xbf16>
    %c0_25 = arith.constant 0 : index
    %c0_26 = arith.constant 0 : index
    %c0_27 = arith.constant 0 : index
    %12 = vector.load %arg9[%c0_25, %c0_26, %c0_27] : memref<2x48x300xbf16, #tpu.memory_space<vmem>>, vector<2x48x300xbf16>
    %13 = vector.shape_cast %12 : vector<2x48x300xbf16> to vector<96x300xbf16>
    %c0_28 = arith.constant 0 : index
    %c0_29 = arith.constant 0 : index
    %14 = vector.load %arg3[%c0_28, %c0_29] : memref<300x180xbf16, #tpu.memory_space<vmem>>, vector<300x180xbf16>
    %cst_30 = arith.constant dense<0.000000e+00> : vector<96x180xf32>
    %15 = tpu.matmul %11, %14, %cst_30 {dimension_numbers = #tpu.dot_dimension_numbers<[1], [0], [0], [1], [0, 0, 1, 1], [], []>} : vector<96x300xbf16>, vector<300x180xbf16>, vector<96x180xf32> -> vector<96x180xf32>
    %c0_31 = arith.constant 0 : index
    %c0_32 = arith.constant 0 : index
    %16 = vector.load %arg4[%c0_31, %c0_32] : memref<300x180xbf16, #tpu.memory_space<vmem>>, vector<300x180xbf16>
    %cst_33 = arith.constant dense<0.000000e+00> : vector<96x180xf32>
    %17 = tpu.matmul %13, %16, %cst_33 {dimension_numbers = #tpu.dot_dimension_numbers<[1], [0], [0], [1], [0, 0, 1, 1], [], []>} : vector<96x300xbf16>, vector<300x180xbf16>, vector<96x180xf32> -> vector<96x180xf32>
    %18 = arith.addf %15, %17 : vector<96x180xf32>
    %19 = vector.shape_cast %18 : vector<96x180xf32> to vector<2x48x180xf32>
    %20 = vector.extract_strided_slice %19 {offsets = [0, 0, 0], sizes = [2, 40, 36], strides = [1, 1, 1]} : vector<2x48x180xf32> to vector<2x40x36xf32>
    %21 = vector.extract_strided_slice %19 {offsets = [0, 1, 36], sizes = [2, 40, 36], strides = [1, 1, 1]} : vector<2x48x180xf32> to vector<2x40x36xf32>
    %22 = arith.addf %20, %21 : vector<2x40x36xf32>
    %23 = vector.extract_strided_slice %19 {offsets = [0, 2, 72], sizes = [2, 40, 36], strides = [1, 1, 1]} : vector<2x48x180xf32> to vector<2x40x36xf32>
    %24 = arith.addf %22, %23 : vector<2x40x36xf32>
    %25 = vector.extract_strided_slice %19 {offsets = [0, 3, 108], sizes = [2, 40, 36], strides = [1, 1, 1]} : vector<2x48x180xf32> to vector<2x40x36xf32>
    %26 = arith.addf %24, %25 : vector<2x40x36xf32>
    %27 = vector.extract_strided_slice %19 {offsets = [0, 4, 144], sizes = [2, 40, 36], strides = [1, 1, 1]} : vector<2x48x180xf32> to vector<2x40x36xf32>
    %28 = arith.addf %26, %27 : vector<2x40x36xf32>
    %c0_34 = arith.constant 0 : index
    %c0_35 = arith.constant 0 : index
    %29 = vector.load %arg5[%c0_34, %c0_35] : memref<1x36xf32, #tpu.memory_space<vmem>>, vector<1x36xf32>
    %30 = vector.shape_cast %29 : vector<1x36xf32> to vector<1x1x36xf32>
    %31 = vector.broadcast %30 : vector<1x1x36xf32> to vector<2x40x36xf32>
    %32 = arith.addf %28, %31 : vector<2x40x36xf32>
    %c0_36 = arith.constant 0 : index
    %c0_37 = arith.constant 0 : index
    %33 = vector.load %arg6[%c0_36, %c0_37] : memref<40x36xf32, #tpu.memory_space<vmem>>, vector<40x36xf32>
    %34 = vector.shape_cast %33 : vector<40x36xf32> to vector<1x40x36xf32>
    %35 = vector.broadcast %34 : vector<1x40x36xf32> to vector<2x40x36xf32>
    %36 = arith.addf %32, %35 : vector<2x40x36xf32>
    %cst_38 = arith.constant dense<0xFF800000> : vector<2x36xf32>
    %37 = vector.multi_reduction <maximumf>, %36, %cst_38 [1] : vector<2x40x36xf32> to vector<2x36xf32>
    %cst_39 = arith.constant 0.000000e+00 : f32
    %38 = vector.broadcast %cst_39 : f32 to vector<2x36xf32>
    %39 = arith.maximumf %37, %38 : vector<2x36xf32>
    %c0_40 = arith.constant 0 : index
    %c0_41 = arith.constant 0 : index
    %40 = vector.load %arg7[%c0_40, %c0_41] : memref<2x36xf32, #tpu.memory_space<vmem>>, vector<2x36xf32>
    tpu.vector_store %arg7[%c0_40, %c0_41], %39 {strides = array<i32>} : memref<2x36xf32, #tpu.memory_space<vmem>>, vector<2x36xf32>,
    return
  }
  func.func @transform_0(%arg0: i32) -> (i32, i32, i32) {
    %c0_i32 = arith.constant 0 : i32
    %c0_i32_0 = arith.constant 0 : i32
    %c0_i32_1 = arith.constant 0 : i32
    return %arg0, %c0_i32, %c0_i32_0 : i32, i32, i32
  }
  func.func @transform_1(%arg0: i32) -> (i32, i32, i32) {
    %c0_i32 = arith.constant 0 : i32
    %c0_i32_0 = arith.constant 0 : i32
    %c0_i32_1 = arith.constant 0 : i32
    return %arg0, %c0_i32, %c0_i32_0 : i32, i32, i32
  }
  func.func @transform_2(%arg0: i32) -> (i32, i32) {
    %c0_i32 = arith.constant 0 : i32
    %c0_i32_0 = arith.constant 0 : i32
    %c0_i32_1 = arith.constant 0 : i32
    return %c0_i32, %c0_i32_0 : i32, i32
  }
  func.func @transform_3(%arg0: i32) -> (i32, i32) {
    %c0_i32 = arith.constant 0 : i32
    %c0_i32_0 = arith.constant 0 : i32
    %c0_i32_1 = arith.constant 0 : i32
    return %c0_i32, %c0_i32_0 : i32, i32
  }
  func.func @transform_4(%arg0: i32) -> (i32, i32) {
    %c0_i32 = arith.constant 0 : i32
    %c0_i32_0 = arith.constant 0 : i32
    %c0_i32_1 = arith.constant 0 : i32
    return %c0_i32, %c0_i32_0 : i32, i32
  }
  func.func @transform_5(%arg0: i32) -> (i32, i32) {
    %c0_i32 = arith.constant 0 : i32
    %c0_i32_0 = arith.constant 0 : i32
    %c0_i32_1 = arith.constant 0 : i32
    return %c0_i32, %c0_i32_0 : i32, i32
  }
  func.func @transform_6(%arg0: i32) -> (i32, i32) {
    %c0_i32 = arith.constant 0 : i32
    %c0_i32_0 = arith.constant 0 : i32
    return %arg0, %c0_i32 : i32, i32
  }
}

</mosaic_0001>

<bundles_post_ra>
// kernel: attr_sum_simple_cnn_forward.1
= control target key start
LH: loop header
LB: loop body
LE: loop exit
PB: predicated region body
PF: predicated region fallthrough
CT: control target
= control target key end

     0   :  { %vm26_vm0 = vcmask 353280   ;;  %vm37_vm1 = vcmask 359424   ;;  %v1908_v1 = vmov 0   ;;  %vm33_vm2 = vcmask 359428   ;;  %s1910_s22 = smov 20   ;;  %s1912_s23 = smov 112   ;;  %s2705_s3 = inlined_call_operand.vmem [shape: bf16[300,180], index: 3, kind: input, shape index: {}]   ;;  %s2706_s2 = inlined_call_operand.vmem [shape: bf16[300,180], index: 2, kind: input, shape index: {}]   ;;  %s2707_s1 = inlined_call_operand.vmem [shape: bf16[2,20,300], index: 1, kind: input, shape index: {}]   ;;  %s2708_s0 = inlined_call_operand.vmem [shape: bf16[2,20,300], index: 0, kind: input, shape index: {}]   ;;  %s2709_s4 = inlined_call_operand.vmem [shape: f32[1,36], index: 4, kind: input, shape index: {}]   ;;  %s2710_s5 = inlined_call_operand.vmem [shape: f32[40,36], index: 5, kind: input, shape index: {}]   ;;  %s2711_s6 = inlined_call_operand.vmem [shape: f32[2,36], index: 6, kind: output, shape index: {}]  }
   0x1   :  { %v1769_v0 = vld [vmem:[%s2705_s3 + $0x4] ss:$8 sps:$4 sm:$0xff]   ;;  %708 = vmatprep.mubr.bf16.mxu0 %v1908_v1  ;;  %24 = vst [vmem:[#allocation2] sm:$0x3] %v1908_v1  ;;  %25 = vst [vmem:[#allocation2 + $0x8] sm:$0x3] %v1908_v1 }
   0x2   :  { %28 = vst [vmem:[#allocation2 + $0x48] sm:$0x3] %v1908_v1  ;;  %29 = vst [vmem:[#allocation2 + $0x50] sm:$0x3] %v1908_v1  ;;  %v1771_v2 = vld [vmem:[%s2705_s3 + $0x104] ss:$8 sps:$4 sm:$0xff]   ;;  %583 = vmatprep.subr.bf16.mxu1 %v1769_v0 }
   0x3   :  { %31 = vst [vmem:[#allocation2 + $0x18] sm:$0xf0] %v1908_v1  ;;  %32 = vst [vmem:[#allocation2 + $0x20] sm:$0xf0] %v1908_v1  ;;  %v1773_v3 = vld [vmem:[%s2705_s3] ss:$8 sps:$4 sm:$0xff]   ;;  %676 = vmatprep.subr.bf16.mxu0 %v1771_v2 }
   0x4   :  { %39 = vst [vmem:[#allocation2 + $0x60] sm:$0xf0] %v1908_v1  ;;  %40 = vst [vmem:[#allocation2 + $0x68] sm:$0xf0] %v1908_v1  ;;  %v1774_v4 = vld [vmem:[%s2705_s3 + $0x100] ss:$8 sps:$4 sm:$0xff]   ;;  %584 = vmatpush1.bf16.msra.mxu1 %v1773_v3 }
   0x5   :  { %144 = vst [vmem:[#allocation3] sm:$0x3] %v1908_v1  ;;  %145 = vst [vmem:[#allocation3 + $0x8] sm:$0x3] %v1908_v1  ;;  %v1775_v5 = vld [vmem:[%s2705_s3 + $0x14] ss:$8 sps:$4 sm:$0xff]   ;;  %677 = vmatpush1.bf16.msra.mxu0 %v1774_v4 }
   0x6   :  { %147 = vst [vmem:[#allocation3 + $0x48] sm:$0x3] %v1908_v1  ;;  %148 = vst [vmem:[#allocation3 + $0x50] sm:$0x3] %v1908_v1  ;;  %v1777_v6 = vld [vmem:[%s2705_s3 + $0x114] ss:$8 sps:$4 sm:$0xff]   ;;  %585 = vmatprep.subr.bf16.mxu1 %v1775_v5 }
   0x7   :  { %150 = vst [vmem:[#allocation3 + $0x18] sm:$0xf0] %v1908_v1  ;;  %151 = vst [vmem:[#allocation3 + $0x20] sm:$0xf0] %v1908_v1  ;;  %v1779_v7 = vld [vmem:[%s2705_s3 + $0x10] ss:$8 sps:$4 sm:$0xff]   ;;  %678 = vmatprep.subr.bf16.mxu0 %v1777_v6 }
   0x8   :  { %156 = vst [vmem:[#allocation3 + $0x60] sm:$0xf0] %v1908_v1  ;;  %157 = vst [vmem:[#allocation3 + $0x68] sm:$0xf0] %v1908_v1  ;;  %v1780_v8 = vld [vmem:[%s2705_s3 + $0x110] ss:$8 sps:$4 sm:$0xff]   ;;  %586 = vmatpush1.bf16.msra.mxu1 %v1779_v7 }
   0x9   :  { %146 = vst.msk [vmem:[#allocation3 + $0x10] sm:$0x3] %vm26_vm0, %v1908_v1  ;;  %27 = vst.msk [vmem:[#allocation2 + $0x10] sm:$0x3] %vm26_vm0, %v1908_v1  ;;  %v1781_v9 = vld [vmem:[%s2705_s3 + $0x24] ss:$8 sps:$4 sm:$0xff]   ;;  %679 = vmatpush1.bf16.msra.mxu0 %v1780_v8 }
   0xa   :  { %30 = vst.msk [vmem:[#allocation2 + $0x58] sm:$0x3] %vm26_vm0, %v1908_v1  ;;  %149 = vst.msk [vmem:[#allocation3 + $0x58] sm:$0x3] %vm26_vm0, %v1908_v1  ;;  %vm576_vm3 = vcmask 1045504   ;;  %587 = vmatprep.subr.bf16.mxu1 %v1781_v9  ;;  %vm132_vm4 = vcmask 359426  }
   0xb   :  { %38 = vst.msk [vmem:[#allocation2 + $0x40] sm:$0xff] %vm37_vm1, %v1908_v1  ;;  %44 = vst.msk [vmem:[#allocation2 + $0x88] sm:$0xff] %vm37_vm1, %v1908_v1  ;;  %v1783_v10 = vld [vmem:[%s2705_s3 + $0x124] ss:$8 sps:$4 sm:$0x3f]   ;;  %vm99_vm5 = vcmask 1041408  }
   0xc   :  { %155 = vst.msk [vmem:[#allocation3 + $0x40] sm:$0xff] %vm37_vm1, %v1908_v1  ;;  %161 = vst.msk [vmem:[#allocation3 + $0x88] sm:$0xff] %vm37_vm1, %v1908_v1  ;;  %v1785_v11 = vld [vmem:[%s2705_s3 + $0x20] ss:$8 sps:$4 sm:$0xff]   ;;  %1633 = vmatprep.subr.msk.bf16.mxu0 %vm576_vm3, %v1783_v10  ;;  %v1787_v13 = vld [vmem:[%s2705_s3 + $0x34] ss:$8 sps:$4 sm:$0xff]  }
   0xd   :  { %152 = vst.msk [vmem:[#allocation3 + $0x28] sm:$0xf0] %vm33_vm2, %v1908_v1  ;;  %34 = vst.msk [vmem:[#allocation2 + $0x28] sm:$0xf0] %vm33_vm2, %v1908_v1  ;;  %v1791_v15 = vld [vmem:[%s2706_s2 + $0x4] ss:$8 sps:$4 sm:$0xff]   ;;  %588 = vmatpush1.bf16.msra.mxu1 %v1785_v11 }
   0xe   :  { %41 = vst.msk [vmem:[#allocation2 + $0x70] sm:$0xf0] %vm33_vm2, %v1908_v1  ;;  %158 = vst.msk [vmem:[#allocation3 + $0x70] sm:$0xf0] %vm33_vm2, %v1908_v1  ;;  %v1793_v16 = vld [vmem:[%s2707_s1 + $0x8] ss:$12 sps:$4 sm:$0xff]   ;;  %589 = vmatprep.subr.bf16.mxu1 %v1787_v13 }
   0xf   :  { %v1786_v12 = vld [vmem:[%s2705_s3 + $0x120] ss:$8 sps:$4 sm:$0x3f]   ;;  %v1792_v17 = vld [vmem:[%s2705_s3 + $0x30] ss:$8 sps:$4 sm:$0xff]   ;;  %v218_v18 = vrot.slane %v1793_v16, 6 }
  0x10   :  { %v578_v14 = vsel %vm576_vm3, %v1786_v12, 0  ;;  %v1794_v19 = vld [vmem:[%s2705_s3 + $0x44] ss:$8 sps:$4 sm:$0xff]   ;;  %v1799_v20 = vld [vmem:[%s2705_s3 + $0x40] ss:$8 sps:$4 sm:$0xff]   ;;  %vm136_vm6 = vcmask 355328  }
  0x11   :  { %681 = vmatpush1.bf16.msra.mxu0 %v578_v14  ;;  %248 = vst.msk [vmem:[#allocation3 + $0x10] sm:$0xfc] %vm132_vm4, %v218_v18  ;;  %590 = vmatpush1.bf16.msra.mxu1 %v1792_v17  ;;  %v1800_v21 = vld [vmem:[%s2705_s3 + $0x54] ss:$8 sps:$4 sm:$0xff]   ;;  %v1789_v22 = vld [vmem:[%s2706_s2] ss:$8 sps:$4 sm:$0xff]  }
  0x12   :  { %981 = vmatprep.subr.bf16.mxu0 %v1791_v15  ;;  %591 = vmatprep.subr.bf16.mxu1 %v1794_v19  ;;  %v1805_v23 = vld [vmem:[%s2705_s3 + $0x50] ss:$8 sps:$4 sm:$0xff]   ;;  %v1798_v24 = vld [vmem:[%s2706_s2 + $0x14] ss:$8 sps:$4 sm:$0xff]   ;;  %v1806_v25 = vld [vmem:[%s2705_s3 + $0x64] ss:$8 sps:$4 sm:$0xff]  }
  0x13   :  { %v1796_v27 = vld [vmem:[%s2706_s2 + $0x10] ss:$8 sps:$4 sm:$0xff]   ;;  %v1811_v28 = vld [vmem:[%s2705_s3 + $0x60] ss:$8 sps:$4 sm:$0xff]   ;;  %v1804_v29 = vld [vmem:[%s2706_s2 + $0x24] ss:$8 sps:$4 sm:$0xff]  }
  0x14   :  { %v1812_v30 = vld [vmem:[%s2705_s3 + $0x74] ss:$8 sps:$4 sm:$0xff]   ;;  %v1802_v31 = vld [vmem:[%s2706_s2 + $0x20] ss:$8 sps:$4 sm:$0xff]   ;;  %v1817_v34 = vld [vmem:[%s2705_s3 + $0x70] ss:$8 sps:$4 sm:$0xff]  }
  0x15   :  { %592 = vmatpush1.bf16.msra.mxu1 %v1799_v20  ;;  %v1810_v32 = vld [vmem:[%s2706_s2 + $0x34] ss:$8 sps:$4 sm:$0xff]   ;;  %v1826_v33 = vld [vmem:[%s2707_s1 + $0x20] ss:$0 sps:$4 sm:$0x33]   ;;  %vm1179_vm7 = vcmask 1046528  }
  0x16   :  { %593 = vmatprep.subr.bf16.mxu1 %v1800_v21  ;;  %v1818_v35 = vld [vmem:[%s2705_s3 + $0x84] ss:$8 sps:$4 sm:$0xff]   ;;  %v223_v36 = vrot.slane %v1826_v33, 6  ;;  %v1808_v37 = vld [vmem:[%s2706_s2 + $0x30] ss:$8 sps:$4 sm:$0xff]   ;;  %vm1316_vm8 = vcmask 1044480  }
  0x17   :  { %v1816_v38 = vld [vmem:[%s2706_s2 + $0x44] ss:$8 sps:$4 sm:$0xff]   ;;  %v1823_v40 = vld [vmem:[%s2705_s3 + $0x80] ss:$8 sps:$4 sm:$0xff]   ;;  %v350_v41 = vld [vmem:[%s2705_s3 + $0x90] sm:$0xff]  ;;  %vm1432_vm9 = vcmask 1043456  }
  0x18   :  { %v278_v26 = vld [vmem:[#allocation3 + $0x10] sm:$0xff]  ;;  %v224_v39 = vsel %vm99_vm5, %v218_v18, %v223_v36  ;;  %v351_v42 = vld [vmem:[%s2705_s3 + $0x98] sm:$0xff]  ;;  %v284_v59 = vld [vmem:[#allocation3 + $0x40] sm:$0xff]  ;;  %vm1401_vm10 = vcmask 162816   ;;  %vm1527_vm11 = vcmask 293888   ;;  %vm1562_vm12 = vcmask 1041409  }
  0x19   :  { %1634 = vmatmul.mubr.msk.bf16.vlgmr.msra.gmra.mrb[0].mxu0 %vm37_vm1, %v278_v26  ;;  %594 = vmatpush1.bf16.msra.mxu1 %v1805_v23  ;;  %251 = vst.msk [vmem:[#allocation3 + $0x28] sm:$0xf] %vm136_vm6, %v224_v39  ;;  %v1824_v43 = vld [vmem:[%s2705_s3 + $0x94] ss:$8 sps:$4 sm:$0xff]   ;;  %v1814_v44 = vld [vmem:[%s2706_s2 + $0x40] ss:$8 sps:$4 sm:$0xff]   ;;  %v1613_v45 = vcombine.low %v350_v41, %v351_v42 }
  0x1a   :  { %982 = vmatpush1.bf16.msra.mxu0 %v1789_v22  ;;  %595 = vmatprep.subr.bf16.mxu1 %v1806_v25  ;;  %v1822_v46 = vld [vmem:[%s2706_s2 + $0x54] ss:$8 sps:$4 sm:$0xff]   ;;  %v1830_v47 = vld [vmem:[%s2705_s3 + $0xa4] ss:$8 sps:$4 sm:$0xff]   ;;  %v1820_v48 = vld [vmem:[%s2706_s2 + $0x50] ss:$8 sps:$4 sm:$0xff]  }
  0x1b   :  { %983 = vmatprep.subr.bf16.mxu0 %v1798_v24  ;;  %718 = vmatprep.mubr.bf16.mxu0 %v1908_v1  ;;  %v1850_v49 = vld [vmem:[%s2707_s1 + $0x2c] ss:$12 sps:$4 sm:$0xff]   ;;  %v1835_v52 = vld [vmem:[%s2705_s3 + $0xa0] ss:$8 sps:$4 sm:$0xff]   ;;  %v1836_v54 = vld [vmem:[%s2705_s3 + $0xb4] ss:$8 sps:$4 sm:$0xff]  }
  0x1c   :  { %v1829_v51 = vld [vmem:[%s2706_s2 + $0x64] ss:$8 sps:$4 sm:$0xff]   ;;  %v227_v53 = vrot.slane %v1850_v49, 6  ;;  %v1827_v55 = vld [vmem:[%s2706_s2 + $0x60] ss:$8 sps:$4 sm:$0xff]   ;;  %v358_v4 = vld [vmem:[%s2705_s3 + $0xd0] sm:$0xff] }
  0x1d   :  { %596 = vmatpush1.bf16.msra.mxu1 %v1811_v28  ;;  %v1834_v56 = vld [vmem:[%s2706_s2 + $0x74] ss:$8 sps:$4 sm:$0xff]   ;;  %v1841_v57 = vld [vmem:[%s2705_s3 + $0xb0] ss:$8 sps:$4 sm:$0xff]   ;;  %v1842_v60 = vld [vmem:[%s2705_s3 + $0xc4] ss:$8 sps:$4 sm:$0xff]  }
  0x1e   :  { %984 = vmatpush1.bf16.msra.mxu0 %v1796_v27  ;;  %597 = vmatprep.subr.bf16.mxu1 %v1812_v30  ;;  %254 = vst.msk [vmem:[#allocation3 + $0x58] sm:$0xfc] %vm132_vm4, %v227_v53  ;;  %v1862_v58 = vld [vmem:[%s2707_s1 + $0x44] ss:$0 sps:$4 sm:$0x33]   ;;  %v359_v7 = vld [vmem:[%s2705_s3 + $0xd8] sm:$0xff] }
  0x1f   :  { %985 = vmatprep.subr.bf16.mxu0 %v1804_v29  ;;  %v1832_v61 = vld [vmem:[%s2706_s2 + $0x70] ss:$8 sps:$4 sm:$0xff]   ;;  %v232_v62 = vrot.slane %v1862_v58, 6  ;;  %v1840_v0 = vld [vmem:[%s2706_s2 + $0x84] ss:$8 sps:$4 sm:$0xff]   ;;  %v1621_v12 = vcombine.low %v358_v4, %v359_v7  ;;  %vm1565_vm13 = vcmask 287744  }
  0x20   :  { %v281_v50 = vld [vmem:[#allocation3 + $0x28] sm:$0xff]  ;;  %v1866_v63 = vld [vmem:[%s2707_s1 + $0x4] ss:$12 sps:$4 sm:$0xff]   ;;  %v1868_v2 = vld [vmem:[%s2707_s1] ss:$12 sps:$4 sm:$0xff]  }
  0x21   :  { %598 = vmatpush1.bf16.msra.mxu1 %v1817_v34  ;;  %1635 = vmatmul.mubr.msk.bf16.gmra.mrb[4].mxu0 %vm37_vm1, %v281_v50  ;;  %v1847_v3 = vld [vmem:[%s2705_s3 + $0xc0] ss:$8 sps:$4 sm:$0xff]   ;;  %v233_v5 = vsel %vm99_vm5, %v227_v53, %v232_v62  ;;  %v217_v6 = vrot.slane %v1866_v63, 6  ;;  %v1848_v8 = vld [vmem:[%s2705_s3 + $0xd4] ss:$8 sps:$4 sm:$0xff]   ;;  %v216_v9 = vrot.slane %v1868_v2, 6 }
  0x22   :  { %986 = vmatpush1.bf16.msra.mxu0 %v1802_v31  ;;  %599 = vmatprep.subr.bf16.mxu1 %v1818_v35  ;;  %257 = vst.msk [vmem:[#allocation3 + $0x70] sm:$0xf] %vm136_vm6, %v233_v5  ;;  %v1838_v10 = vld [vmem:[%s2706_s2 + $0x80] ss:$8 sps:$4 sm:$0xff]   ;;  %v1846_v11 = vld [vmem:[%s2706_s2 + $0x94] ss:$8 sps:$4 sm:$0xff]  }
  0x23   :  { %987 = vmatprep.subr.bf16.mxu0 %v1810_v32  ;;  %728 = vmatprep.mubr.bf16.mxu0 %v1908_v1  ;;  %247 = vst [vmem:[#allocation3 + $0x8] sm:$0xfc] %v217_v6  ;;  %246 = vst [vmem:[#allocation3] sm:$0xfc] %v216_v9  ;;  %v166_v13 = vld [vmem:[%s2707_s1 + $0x18] sm:$0x33] }
  0x24   :  { %v1854_v15 = vld [vmem:[%s2705_s3 + $0xe4] ss:$8 sps:$4 sm:$0xff]   ;;  %v1587_v16 = vcombine.high %v166_v13, %v166_v13  ;;  %v1586_v17 = vcombine.low %v166_v13, %v166_v13  ;;  %v1844_v18 = vld [vmem:[%s2706_s2 + $0x90] ss:$8 sps:$4 sm:$0xff]   ;;  %v1859_v19 = vld [vmem:[%s2705_s3 + $0xe0] ss:$8 sps:$4 sm:$0xff]  }
  0x25   :  { %600 = vmatpush1.bf16.msra.mxu1 %v1823_v40  ;;  %v287_v14 = vld [vmem:[#allocation3 + $0x58] sm:$0xff]  ;;  %v1885_v21 = vld [vmem:[%s2708_s0 + $0x4] ss:$12 sps:$4 sm:$0xff]   ;;  %v363_v26 = vld [vmem:[%s2705_s3 + $0xf8] sm:$0xff] }
  0x26   :  { %988 = vmatpush1.bf16.msra.mxu0 %v1808_v37  ;;  %601 = vmatprep.subr.bf16.mxu1 %v1824_v43  ;;  %v1883_v20 = vld [vmem:[%s2708_s0] ss:$12 sps:$4 sm:$0xff]   ;;  %v362_v23 = vld [vmem:[%s2705_s3 + $0xf0] sm:$0xff]  ;;  %v221_v24 = vrot.slane %v1587_v16, 6  ;;  %v219_v25 = vrot.slane %v1586_v17, 6  ;;  %v101_v29 = vrot.slane %v1885_v21, 6 }
  0x27   :  { %989 = vmatprep.subr.bf16.mxu0 %v1816_v38  ;;  %v1853_v22 = vld [vmem:[%s2706_s2 + $0xa4] ss:$8 sps:$4 sm:$0xff]   ;;  %v1860_v27 = vld [vmem:[%s2705_s3 + $0xf4] ss:$8 sps:$4 sm:$0xff]   ;;  %v100_v28 = vrot.slane %v1883_v20, 6  ;;  %v1625_v39 = vcombine.low %v362_v23, %v363_v26  ;;  %s1911_s3 = smov 56  }
  0x28   :  { %v222_v31 = vsel %vm99_vm5, %v217_v6, %v221_v24  ;;  %v220_v32 = vsel %vm99_vm5, %v216_v9, %v219_v25  ;;  %v49_v33 = vld [vmem:[%s2708_s0 + $0x18] sm:$0x33]  ;;  %v1851_v34 = vld [vmem:[%s2706_s2 + $0xa0] ss:$8 sps:$4 sm:$0xff]   ;;  %131 = vst [vmem:[#allocation2 + $0x8] sm:$0xfc] %v101_v29 }
  0x29   :  { %602 = vmatpush1.bf16.msra.mxu1 %v1613_v45  ;;  %1636 = vmatmul.mubr.msk.bf16.gmra.mrb[8].mxu0 %vm37_vm1, %v284_v59  ;;  %250 = vst [vmem:[#allocation3 + $0x20] sm:$0xf] %v222_v31  ;;  %249 = vst [vmem:[#allocation3 + $0x18] sm:$0xf] %v220_v32  ;;  %v1575_v35 = vcombine.high %v49_v33, %v49_v33  ;;  %v1574_v36 = vcombine.low %v49_v33, %v49_v33  ;;  %v1891_v37 = vld [vmem:[%s2707_s1 + $0x28] ss:$12 sps:$4 sm:$0xff]  }
  0x2a   :  { %990 = vmatpush1.bf16.msra.mxu0 %v1814_v44  ;;  %603 = vmatprep.subr.bf16.mxu1 %v1830_v47  ;;  %v277_v30 = vld [vmem:[#allocation3 + $0x8] sm:$0xff]  ;;  %130 = vst [vmem:[#allocation2] sm:$0xfc] %v100_v28  ;;  %v1893_v38 = vld [vmem:[%s2707_s1 + $0x24] ss:$12 sps:$4 sm:$0xff]   ;;  %v226_v43 = vrot.slane %v1891_v37, 6 }
  0x2b   :  { %991 = vmatprep.subr.bf16.mxu0 %v1822_v46  ;;  %738 = vmatprep.mubr.bf16.mxu0 %v1908_v1  ;;  %v172_v40 = vld [vmem:[%s2707_s1 + $0x3c] sm:$0x33]  ;;  %v105_v41 = vrot.slane %v1575_v35, 6  ;;  %v103_v42 = vrot.slane %v1574_v36, 6  ;;  %v225_v44 = vrot.slane %v1893_v38, 6 }
  0x2c   :  { %615 = vmatprep.mubr.bf16.mxu1 %v277_v30  ;;  %v1858_v45 = vld [vmem:[%s2706_s2 + $0xb4] ss:$8 sps:$4 sm:$0xff]   ;;  %v290_v46 = vld [vmem:[#allocation3 + $0x70] sm:$0xff]  ;;  %v1592_v49 = vcombine.low %v172_v40, %v172_v40  ;;  %v1856_v50 = vld [vmem:[%s2706_s2 + $0xb0] ss:$8 sps:$4 sm:$0xff]  }
  0x2d   :  { %604 = vmatpush1.bf16.msra.mxu1 %v1835_v52  ;;  %v2237_v47 = vld [vmem:[%s2706_s2 + $0x104] ss:$8 sps:$4 sm:$0xff]   ;;  %v106_v52 = vsel %vm99_vm5, %v101_v29, %v105_v41  ;;  %v104_v53 = vsel %vm99_vm5, %v100_v28, %v103_v42  ;;  %253 = vst [vmem:[#allocation3 + $0x50] sm:$0xfc] %v226_v43  ;;  %252 = vst [vmem:[#allocation3 + $0x48] sm:$0xfc] %v225_v44 }
  0x2e   :  { %992 = vmatpush1.bf16.msra.mxu0 %v1820_v48  ;;  %605 = vmatprep.subr.bf16.mxu1 %v1836_v54  ;;  %v1593_v48 = vcombine.high %v172_v40, %v172_v40  ;;  %v1899_v54 = vld [vmem:[%s2708_s0 + $0x28] ss:$12 sps:$4 sm:$0xff]   ;;  %135 = vst [vmem:[#allocation2 + $0x20] sm:$0xf] %v106_v52  ;;  %134 = vst [vmem:[#allocation2 + $0x18] sm:$0xf] %v104_v53 }
  0x2f   :  { %993 = vmatprep.subr.bf16.mxu0 %v1829_v51  ;;  %v2245_v51 = vld [vmem:[%s2706_s2 + $0x100] ss:$8 sps:$4 sm:$0xff]   ;;  %v228_v59 = vrot.slane %v1592_v49, 6  ;;  %v1865_v2 = vld [vmem:[%s2706_s2 + $0xc4] ss:$8 sps:$4 sm:$0xff]   ;;  %v293_v20 = vld [vmem:[#allocation3 + $0x88] sm:$0xff] }
  0x30   :  { %v230_v58 = vrot.slane %v1593_v48, 6  ;;  %v1863_v7 = vld [vmem:[%s2706_s2 + $0xc0] ss:$8 sps:$4 sm:$0xff]   ;;  %v2280_v9 = vld [vmem:[%s2706_s2 + $0x110] ss:$8 sps:$4 sm:$0xff]  }
  0x31   :  { %606 = vmatpush1.bf16.msra.mxu1 %v1841_v57  ;;  %1637 = vmatmul.mubr.msk.bf16.gmra.mrb[12].mxu0 %vm37_vm1, %v287_v14  ;;  %v276_v57 = vld [vmem:[#allocation3] sm:$0xff]  ;;  %v229_v5 = vsel %vm99_vm5, %v225_v44, %v228_v59  ;;  %v1905_v13 = vld [vmem:[%s2708_s0 + $0x44] ss:$0 sps:$4 sm:$0x33]   ;;  %v259_v23 = vld [vmem:[#allocation2 + $0x8] sm:$0xff] }
  0x32   :  { %994 = vmatpush1.bf16.msra.mxu0 %v1827_v55  ;;  %607 = vmatprep.subr.bf16.mxu1 %v1842_v60  ;;  %v1901_v55 = vld [vmem:[%s2708_s0 + $0x24] ss:$12 sps:$4 sm:$0xff]   ;;  %v231_v4 = vsel %vm99_vm5, %v226_v43, %v230_v58  ;;  %255 = vst [vmem:[#allocation3 + $0x60] sm:$0xf] %v229_v5  ;;  %v1906_v16 = vld [vmem:[%s2708_s0 + $0x8] ss:$12 sps:$4 sm:$0xff]  }
  0x33   :  { %995 = vmatprep.subr.bf16.mxu0 %v1834_v56  ;;  %748 = vmatprep.mubr.bf16.mxu0 %v1908_v1  ;;  %v55_v56 = vld [vmem:[%s2708_s0 + $0x3c] sm:$0x33]  ;;  %v109_v62 = vrot.slane %v1901_v55, 6  ;;  %256 = vst [vmem:[#allocation3 + $0x68] sm:$0xf] %v231_v4 }
  0x34   :  { %v1581_v60 = vcombine.high %v55_v56, %v55_v56  ;;  %v1580_v63 = vcombine.low %v55_v56, %v55_v56  ;;  %v1896_v14 = vld [vmem:[%s2706_s2 + $0x124] ss:$8 sps:$4 sm:$0x3f]   ;;  %v1871_v17 = vld [vmem:[%s2706_s2 + $0xd4] ss:$8 sps:$4 sm:$0xff]  }
  0x35   :  { %608 = vmatpush1.bf16.msra.mxu1 %v1847_v3  ;;  %v2268_v3 = vld [vmem:[%s2706_s2 + $0x114] ss:$8 sps:$4 sm:$0xff]   ;;  %138 = vst [vmem:[#allocation2 + $0x48] sm:$0xfc] %v109_v62  ;;  %v1869_v26 = vld [vmem:[%s2706_s2 + $0xd0] ss:$8 sps:$4 sm:$0xff]  }
  0x36   :  { %996 = vmatpush1.bf16.msra.mxu0 %v1832_v61  ;;  %609 = vmatprep.subr.bf16.mxu1 %v1848_v8  ;;  %v110_v61 = vrot.slane %v1899_v54, 6  ;;  %v114_v6 = vrot.slane %v1581_v60, 6  ;;  %v280_v8 = vld [vmem:[#allocation3 + $0x20] sm:$0xff]  ;;  %v1898_v21 = vld [vmem:[%s2706_s2 + $0x120] ss:$8 sps:$4 sm:$0x3f]  }
  0x37   :  { %997 = vmatprep.subr.bf16.mxu0 %v1840_v0  ;;  %v1904_v0 = vld [vmem:[%s2708_s0 + $0x2c] ss:$12 sps:$4 sm:$0xff]   ;;  %v976_v30 = vsel %vm576_vm3, %v1898_v21, 0  ;;  %v1875_v31 = vld [vmem:[%s2706_s2 + $0xe0] ss:$8 sps:$4 sm:$0xff]  }
  0x38   :  { %139 = vst [vmem:[#allocation2 + $0x50] sm:$0xfc] %v110_v61  ;;  %v1877_v28 = vld [vmem:[%s2706_s2 + $0xe4] ss:$8 sps:$4 sm:$0xff]   ;;  %v1882_v32 = vld [vmem:[%s2706_s2 + $0xf4] ss:$8 sps:$4 sm:$0xff]  }
  0x39   :  { %610 = vmatpush1.bf16.msra.mxu1 %v1621_v12  ;;  %1638 = vmatmul.mubr.msk.bf16.gmra.mrb[16].mxu0 %vm37_vm1, %v290_v46  ;;  %v115_v12 = vsel %vm99_vm5, %v110_v61, %v114_v6  ;;  %v1880_v33 = vld [vmem:[%s2706_s2 + $0xf0] ss:$8 sps:$4 sm:$0xff]   ;;  %v258_v35 = vld [vmem:[#allocation2] sm:$0xff]  ;;  %s1909_s2 = smov 92  }
  0x3a   :  { %998 = vmatpush1.bf16.msra.mxu0 %v1838_v10  ;;  %611 = vmatprep.subr.bf16.mxu1 %v1854_v15  ;;  %v112_v10 = vrot.slane %v1580_v63, 6  ;;  %142 = vst [vmem:[#allocation2 + $0x68] sm:$0xf] %v115_v12  ;;  %v262_v36 = vld [vmem:[#allocation2 + $0x20] sm:$0xff]  ;;  %v285_v37 = vld [vmem:[#allocation3 + $0x48] sm:$0xff]  ;;  %v288_v40 = vld [vmem:[#allocation3 + $0x60] sm:$0xff] }
  0x3b   :  { %999 = vmatprep.subr.bf16.mxu0 %v1846_v11  ;;  %758 = vmatprep.mubr.bf16.mxu0 %v1908_v1  ;;  %v111_v11 = vrot.slane %v1904_v0, 6  ;;  %v289_v38 = vld [vmem:[#allocation3 + $0x68] sm:$0xff] }
  0x3c   :  { %v113_v15 = vsel %vm99_vm5, %v109_v62, %v112_v10  ;;  %v267_v42 = vld [vmem:[#allocation2 + $0x48] sm:$0xff] }
  0x3d   :  { %612 = vmatpush1.bf16.msra.mxu1 %v1859_v19  ;;  %140 = vst.msk [vmem:[#allocation2 + $0x58] sm:$0xfc] %vm132_vm4, %v111_v11  ;;  %141 = vst [vmem:[#allocation2 + $0x60] sm:$0xf] %v113_v15 }
  0x3e   :  { %1000 = vmatpush1.bf16.msra.mxu0 %v1844_v18  ;;  %613 = vmatprep.subr.bf16.mxu1 %v1860_v27  ;;  %v116_v18 = vrot.slane %v1905_v13, 6  ;;  %v1907_v19 = vld [vmem:[%s2708_s0 + $0x20] ss:$0 sps:$4 sm:$0x33]   ;;  %v279_v27 = vld [vmem:[#allocation3 + $0x18] sm:$0xff] }
  0x3f   :  { %1001 = vmatprep.subr.bf16.mxu0 %v1853_v22  ;;  %v102_v22 = vrot.slane %v1906_v16, 6  ;;  %v107_v25 = vrot.slane %v1907_v19, 6  ;;  %v268_v41 = vld [vmem:[#allocation2 + $0x50] sm:$0xff] }
  0x40   :  { %v117_v24 = vsel %vm99_vm5, %v111_v11, %v116_v18 }
  0x41   :  { %614 = vmatpush1.bf16.msra.mxu1 %v1625_v39  ;;  %143 = vst.msk [vmem:[#allocation2 + $0x70] sm:$0xf] %vm136_vm6, %v117_v24  ;;  %1639 = vmatmul.mubr.msk.bf16.gmra.mrb[20].mxu0 %vm37_vm1, %v293_v20  ;;  %v108_v29 = vsel %vm99_vm5, %v102_v22, %v107_v25  ;;  %v261_v39 = vld [vmem:[#allocation2 + $0x18] sm:$0xff]  ;;  %v271_v43 = vld [vmem:[#allocation2 + $0x68] sm:$0xff] }
  0x42   :  { %1002 = vmatpush1.bf16.msra.mxu0 %v1851_v34  ;;  %1686 = vmatprep.subr.bf16.mxu1 %v2237_v47  ;;  %133 = vst.msk [vmem:[#allocation2 + $0x10] sm:$0xfc] %vm132_vm4, %v102_v22  ;;  %v286_v34 = vld [vmem:[#allocation3 + $0x50] sm:$0xff] }
  0x43   :  { %1003 = vmatprep.subr.bf16.mxu0 %v1858_v45  ;;  %1013 = vmatprep.mubr.bf16.mxu0 %v259_v23  ;;  %137 = vst.msk [vmem:[#allocation2 + $0x28] sm:$0xf] %vm136_vm6, %v108_v29 }
  0x44   :  { %616 = vmatmul.mubr.bf16.vlgmr.msra.gmra.mrb[0].mxu1 %v276_v57  ;;  %v269_v44 = vld [vmem:[#allocation2 + $0x58] sm:$0xff]  ;;  %v270_v45 = vld [vmem:[#allocation2 + $0x60] sm:$0xff] }
  0x45   :  { %1689 = vmatpush1.bf16.msra.mxu1 %v2245_v51  ;;  %625 = vmatprep.mubr.bf16.mxu1 %v280_v8 }
  0x46   :  { %1004 = vmatpush1.bf16.msra.mxu0 %v1856_v50  ;;  %1687 = vmatprep.subr.bf16.mxu1 %v2268_v3  ;;  %v266_v50 = vld [vmem:[#allocation2 + $0x40] sm:$0xff] }
  0x47   :  { %1005 = vmatprep.subr.bf16.mxu0 %v1865_v2 }
  0x48   :  { %v272_v46 = vld [vmem:[#allocation2 + $0x70] sm:$0xff] }
  0x49   :  { %1690 = vmatpush1.bf16.msra.mxu1 %v2280_v9  ;;  %v260_v48 = vld [vmem:[#allocation2 + $0x10] sm:$0xff] }
  0x4a   :  { %1006 = vmatpush1.bf16.msra.mxu0 %v1863_v7  ;;  %1688 = vmatprep.subr.msk.bf16.mxu1 %vm576_vm3, %v1896_v14  ;;  %v263_v49 = vld [vmem:[#allocation2 + $0x28] sm:$0xff] }
  0x4b   :  { %1007 = vmatprep.subr.bf16.mxu0 %v1871_v17 }
  0x4c   :  { %626 = vmatmul.mubr.bf16.gmra.mrb[4].mxu1 %v279_v27 }
  0x4d   :  { %635 = vmatprep.mubr.bf16.mxu1 %v1908_v1  ;;  %1691 = vmatpush1.bf16.msra.mxu1 %v976_v30 }
  0x4e   :  { %1008 = vmatpush1.bf16.msra.mxu0 %v1869_v26 }
  0x4f   :  { %1009 = vmatprep.subr.bf16.mxu0 %v1877_v28 }
  0x52   :  { %1010 = vmatpush1.bf16.msra.mxu0 %v1875_v31 }
  0x53   :  { %1011 = vmatprep.subr.bf16.mxu0 %v1882_v32 }
  0x54   :  { %636 = vmatmul.mubr.bf16.gmra.mrb[8].mxu1 %v1908_v1 }
  0x55   :  { %645 = vmatprep.mubr.bf16.mxu1 %v286_v34 }
  0x56   :  { %1012 = vmatpush1.bf16.msra.mxu0 %v1880_v33 }
  0x57   :  { %1074 = vmatprep.subr.bf16.mxu0 %v2237_v47  ;;  %v275_v47 = vld [vmem:[#allocation2 + $0x88] sm:$0xff] }
  0x59   :  { %1014 = vmatmul.mubr.bf16.vlgmr.msra.gmra.mrb[0].mxu0 %v258_v35 }
  0x5a   :  { %1023 = vmatprep.mubr.bf16.mxu0 %v262_v36  ;;  %1075 = vmatpush1.bf16.msra.mxu0 %v2245_v51 }
  0x5b   :  { %1076 = vmatprep.subr.bf16.mxu0 %v2268_v3 }
  0x5c   :  { %646 = vmatmul.mubr.bf16.gmra.mrb[12].mxu1 %v285_v37 }
  0x5d   :  { %655 = vmatprep.mubr.bf16.mxu1 %v289_v38 }
  0x5e   :  { %1077 = vmatpush1.bf16.msra.mxu0 %v2280_v9 }
  0x5f   :  { %1678 = vmatprep.subr.msk.bf16.mxu0 %vm576_vm3, %v1896_v14 }
  0x61   :  { %1024 = vmatmul.mubr.bf16.gmra.mrb[4].mxu0 %v261_v39 }
  0x62   :  { %1033 = vmatprep.mubr.bf16.mxu0 %v1908_v1  ;;  %1079 = vmatpush1.bf16.msra.mxu0 %v976_v30 }
  0x64   :  { %656 = vmatmul.mubr.bf16.gmra.mrb[16].mxu1 %v288_v40 }
  0x65   :  { %665 = vmatprep.mubr.bf16.mxu1 %v1908_v1 }
  0x69   :  { %1034 = vmatmul.mubr.bf16.gmra.mrb[8].mxu0 %v1908_v1 }
  0x6a   :  { %1043 = vmatprep.mubr.bf16.mxu0 %v268_v41 }
  0x6c   :  { %666 = vmatmul.mubr.bf16.gmra.mrb[20].mxu1 %v1908_v1 }
  0x6d   :  { %1136 = vmatprep.mubr.bf16.mxu1 %v1908_v1 }
  0x71   :  { %1044 = vmatmul.mubr.bf16.gmra.mrb[12].mxu0 %v267_v42 }
  0x72   :  { %1053 = vmatprep.mubr.bf16.mxu0 %v271_v43 }
  0x74   :  { %1682 = vmatmul.mubr.msk.bf16.vlgmr.msra.gmra.mrb[24].mxu1 %vm37_vm1, %v269_v44 }
  0x75   :  { %1146 = vmatprep.mubr.bf16.mxu1 %v1908_v1 }
  0x79   :  { %1054 = vmatmul.mubr.bf16.gmra.mrb[16].mxu0 %v270_v45 }
  0x7a   :  { %1063 = vmatprep.mubr.bf16.mxu0 %v1908_v1 }
  0x7c   :  { %1683 = vmatmul.mubr.msk.bf16.gmra.mrb[28].mxu1 %vm37_vm1, %v272_v46 }
  0x7d   :  { %1156 = vmatprep.mubr.bf16.mxu1 %v1908_v1 }
  0x81   :  { %1064 = vmatmul.mubr.bf16.gmra.mrb[20].mxu0 %v1908_v1 }
  0x82   :  { %1106 = vmatprep.mubr.bf16.mxu0 %v1908_v1 }
  0x84   :  { %1684 = vmatmul.mubr.msk.bf16.gmra.mrb[32].mxu1 %vm37_vm1, %v275_v47 }
  0x89   :  { %1679 = vmatmul.mubr.msk.bf16.vlgmr.msra.gmra.mrb[0].mxu0 %vm37_vm1, %v260_v48 }
  0x8a   :  { %1116 = vmatprep.mubr.bf16.mxu0 %v1908_v1 }
  0x91   :  { %1680 = vmatmul.mubr.msk.bf16.gmra.mrb[4].mxu0 %vm37_vm1, %v263_v49 }
  0x92   :  { %1126 = vmatprep.mubr.bf16.mxu0 %v1908_v1 }
  0x99   :  { %1681 = vmatmul.mubr.msk.bf16.gmra.mrb[8].mxu0 %vm37_vm1, %v266_v50 }
 0x117   :  { %v2354_v51 = vpop.f32.mrb[0].mxu1 }
 0x118   :  { %v2356_v52 = vpop.f32.mrb[1].mxu1 }
 0x119   :  { %v2358_v53 = vpop.f32.mrb[2].mxu1 }
 0x11a   :  { %v2360_v54 = vpop.f32.mrb[3].mxu1 }
 0x11f   :  { %v2362_v55 = vpop.f32.mrb[4].mxu1 }
 0x120   :  { %v2364_v56 = vpop.f32.mrb[5].mxu1 }
 0x121   :  { %v2366_v57 = vpop.f32.mrb[6].mxu1 }
 0x122   :  { %v2368_v58 = vpop.f32.mrb[7].mxu1 }
 0x127   :  { %v2370_v1 = vpop.f32.mrb[8].mxu1 }
 0x128   :  { %v2372_v59 = vpop.f32.mrb[9].mxu1 }
 0x129   :  { %v2374_v60 = vpop.f32.mrb[10].mxu1 }
 0x12a   :  { %v2376_v61 = vpop.f32.mrb[11].mxu1 }
 0x12f   :  { %v647_v62 = vpop.f32.mrb[12].mxu1 }
 0x130   :  { %v649_v63 = vpop.f32.mrb[13].mxu1 }
 0x131   :  { %v651_v0 = vpop.f32.mrb[14].mxu1 }
 0x132   :  { %v653_v2 = vpop.f32.mrb[15].mxu1 }
 0x137   :  { %v657_v3 = vpop.f32.mrb[16].mxu1 }
 0x138   :  { %v659_v4 = vpop.f32.mrb[17].mxu1 }
 0x139   :  { %v661_v5 = vpop.f32.mrb[18].mxu1 }
 0x13a   :  { %v663_v6 = vpop.f32.mrb[19].mxu1 }
 0x13f   :  { %v667_v7 = vpop.f32.mrb[20].mxu1 }
 0x140   :  { %v2378_v8 = vpop.f32.mrb[21].mxu1 }
 0x141   :  { %v2380_v9 = vpop.f32.mrb[22].mxu1 }
 0x142   :  { %v2382_v10 = vpop.f32.mrb[23].mxu1 }
 0x144   :  { %v1045_v11 = vpop.f32.mrb[12].mxu0 }
 0x145   :  { %v1704_v12 = vadd.f32 %v1045_v11, %v647_v62  ;;  %v1047_v13 = vpop.f32.mrb[13].mxu0 }
 0x146   :  { %v1706_v14 = vadd.f32 %v1047_v13, %v649_v63  ;;  %v1049_v15 = vpop.f32.mrb[14].mxu0 }
 0x147   :  { %v1708_v16 = vadd.f32 %v1049_v15, %v651_v0  ;;  %v1051_v17 = vpop.f32.mrb[15].mxu0  ;;  %v1138_v19 = vpop.f32.mrb[24].mxu1 }
 0x148   :  { %v1710_v18 = vadd.f32 %v1051_v17, %v653_v2  ;;  %v2384_v20 = vadd.f32 %v1704_v12, %v1138_v19  ;;  %v1140_v21 = vpop.f32.mrb[25].mxu1 }
 0x149   :  { %v1707_v22 = vadd.f32 %v1706_v14, %v1140_v21  ;;  %v1142_v23 = vpop.f32.mrb[26].mxu1 }
 0x14a   :  { %v2386_v24 = vadd.f32 %v1708_v16, %v1142_v23  ;;  %v1144_v25 = vpop.f32.mrb[27].mxu1  ;;  %v1191_v31 = vrot.slane %v2384_v20, 1  ;;  %v1253_v48 = vrot.slane %v2384_v20, 2  ;;  %v1339_v15 = vrot.slane %v2384_v20, 3 }
 0x14b   :  { %v1711_v27 = vadd.f32 %v1710_v18, %v1144_v25  ;;  %v1342_v30 = vrot.slane %v1707_v22, 3  ;;  %v1444_v35 = vrot.slane %v1707_v22, 4 }
 0x14c   :  { %v1055_v26 = vpop.f32.mrb[16].mxu0  ;;  %v1192_v32 = vrot.slane %v2386_v24, 1  ;;  %v1254_v41 = vrot.slane %v2386_v24, 2 }
 0x14d   :  { %v1712_v28 = vadd.f32 %v1055_v26, %v657_v3  ;;  %v1057_v29 = vpop.f32.mrb[17].mxu0  ;;  %v1343_v36 = vrot.slane %v1711_v27, 3  ;;  %v1445_v37 = vrot.slane %v1711_v27, 4  ;;  %v1340_v3 = vrot.slane %v2386_v24, 3 }
 0x14e   :  { %v1714_v33 = vadd.f32 %v1057_v29, %v659_v4  ;;  %v1059_v34 = vpop.f32.mrb[18].mxu0  ;;  %v1193_v40 = vsel %vm1179_vm7, %v1191_v31, %v1192_v32  ;;  %v1255_v0 = vsel %vm576_vm3, %v1253_v48, %v1254_v41 }
 0x14f   :  { %v1716_v38 = vadd.f32 %v1059_v34, %v661_v5  ;;  %v1061_v39 = vpop.f32.mrb[19].mxu0  ;;  %v1148_v43 = vpop.f32.mrb[28].mxu1  ;;  %1212 = vrot.lane.b32.xlu0 %v1193_v40, %s1909_s2  ;;  %v1344_v44 = vsel %vm1316_vm8, %v1342_v30, %v1343_v36  ;;  %v1446_v45 = vsel %vm1432_vm9, %v1444_v35, %v1445_v37  ;;  %v1341_v25 = vsel %vm1316_vm8, %v1339_v15, %v1340_v3 }
 0x150   :  { %v1718_v42 = vadd.f32 %v1061_v39, %v663_v6  ;;  %v2395_v46 = vadd.f32 %v1712_v28, %v1148_v43  ;;  %v1150_v47 = vpop.f32.mrb[29].mxu1  ;;  %1383 = vrot.lane.b32.xlu1 %v1344_v44, %s1910_s22 }
 0x151   :  { %v1715_v49 = vadd.f32 %v1714_v33, %v1150_v47  ;;  %v1152_v50 = vpop.f32.mrb[30].mxu1 }
 0x152   :  { %v2399_v62 = vadd.f32 %v1716_v38, %v1152_v50  ;;  %v1154_v63 = vpop.f32.mrb[31].mxu1  ;;  %v1194_v2 = vrot.slane %v2395_v46, 1  ;;  %v1256_v16 = vrot.slane %v2395_v46, 2  ;;  %v1345_v35 = vrot.slane %v2395_v46, 3 }
 0x153   :  { %v1347_v5 = vrot.slane %v1715_v49, 3  ;;  %v1447_v6 = vrot.slane %v1715_v49, 4  ;;  %v2404_v11 = vadd.f32 %v1718_v42, %v1154_v63  ;;  %1274 = vrot.lane.b32.xlu0 %v1255_v0, %s1911_s3 }
 0x154   :  { %v1065_v4 = vpop.f32.mrb[20].mxu0  ;;  %v1195_v14 = vsel %vm1179_vm7, %v1192_v32, %v1194_v2  ;;  %v1346_v47 = vsel %vm1316_vm8, %v1340_v3, %v1345_v35  ;;  %v1349_v48 = vrot.slane %v2399_v62, 3 }
 0x155   :  { %v1720_v12 = vadd.f32 %v1065_v4, %v667_v7  ;;  %v1067_v13 = vpop.f32.mrb[21].mxu0  ;;  %v1351_v19 = vrot.slane %v2404_v11, 3  ;;  %v1449_v21 = vrot.slane %v2404_v11, 4  ;;  %1214 = vrot.lane.b32.xlu1 %v1195_v14, %s1909_s2  ;;  %v1348_v7 = vsel %vm1316_vm8, %v1343_v36, %v1347_v5 }
 0x156   :  { %v1722_v17 = vadd.f32 %v1067_v13, %v2378_v8  ;;  %v1069_v18 = vpop.f32.mrb[22].mxu0  ;;  %v1448_v26 = vsel %vm1432_vm9, %v1445_v37, %v1447_v6 }
 0x157   :  { %v1724_v22 = vadd.f32 %v1069_v18, %v2380_v9  ;;  %v1071_v23 = vpop.f32.mrb[23].mxu0  ;;  %v1158_v28 = vpop.f32.mrb[32].mxu1  ;;  %1381 = vrot.lane.b32.xlu0 %v1341_v25, %s1910_s22  ;;  %v2423_v8 = vsel %vm1316_vm8, %v1347_v5, %v1351_v19  ;;  %v2426_v29 = vsel %vm1432_vm9, %v1447_v6, %v1449_v21  ;;  %v1257_v9 = vsel %vm576_vm3, %v1254_v41, %v1256_v16 }
 0x158   :  { %v1726_v27 = vadd.f32 %v1071_v23, %v2382_v10  ;;  %v2428_v30 = vadd.f32 %v1720_v12, %v1158_v28  ;;  %v1160_v31 = vpop.f32.mrb[33].mxu1  ;;  %v1258_v6 = vrot.slane %v2399_v62, 2 }
 0x159   :  { %v1723_v32 = vadd.f32 %v1722_v17, %v1160_v31  ;;  %v1162_v33 = vpop.f32.mrb[34].mxu1  ;;  %1276 = vrot.lane.b32.xlu1 %v1257_v9, %s1911_s3 }
 0x15a   :  { %v2434_v10 = vadd.f32 %v1724_v22, %v1162_v33  ;;  %v1164_v34 = vpop.f32.mrb[35].mxu1 }
 0x15b   :  { %v1355_v37 = vrot.slane %v1723_v32, 3  ;;  %v1727_v38 = vadd.f32 %v1726_v27, %v1164_v34  ;;  %1465 = vrot.lane.b32.xlu0 %v1446_v45, %s1912_s23  ;;  %v1451_v50 = vrot.slane %v1723_v32, 4 }
 0x15c   :  { %v1108_v36 = vpop.f32.mrb[0].mxu0 }
 0x15d   :  { %v2439_v39 = vadd.f32 %v1108_v36, %v2354_v51  ;;  %v1110_v40 = vpop.f32.mrb[1].mxu0  ;;  %1387 = vrot.lane.b32.xlu1 %v1348_v7, %s1910_s22  ;;  %v1359_v45 = vrot.slane %v1727_v38, 3  ;;  %v1196_v51 = vrot.slane %v2399_v62, 1  ;;  %v1453_v63 = vrot.slane %v1727_v38, 4 }
 0x15e   :  { %v1693_v41 = vadd.f32 %v1110_v40, %v2356_v52  ;;  %v1112_v42 = vpop.f32.mrb[2].mxu0  ;;  %v2452_v52 = vsel %vm1316_vm8, %v1351_v19, %v1355_v37  ;;  %v2476_v7 = vsel %vm1432_vm9, %v1449_v21, %v1451_v50 }
 0x15f   :  { %v2444_v43 = vadd.f32 %v1112_v42, %v2358_v53  ;;  %v1114_v44 = vpop.f32.mrb[3].mxu0  ;;  %1385 = vrot.lane.b32.xlu0 %v1346_v47, %s1910_s22  ;;  %v1197_v12 = vsel %vm1179_vm7, %v1194_v2, %v1196_v51  ;;  %v2469_v15 = vsel %vm1316_vm8, %v1355_v37, %v1359_v45  ;;  %v1180_v19 = vrot.slane %v2439_v39, 1 }
 0x160   :  { %v1695_v49 = vadd.f32 %v1114_v44, %v2360_v54  ;;  %v1320_v0 = vrot.slane %v1693_v41, 3  ;;  %v1433_v53 = vrot.slane %v1693_v41, 4  ;;  %v1350_v54 = vsel %vm1316_vm8, %v1345_v35, %v1349_v48 }
 0x161   :  { %1467 = vrot.lane.b32.xlu1 %v1448_v26, %s1912_s23  ;;  %v1181_v3 = vrot.slane %v2444_v43, 1  ;;  %v2479_v22 = vsel %vm1432_vm9, %v1451_v50, %v1453_v63  ;;  %v1243_v27 = vrot.slane %v2444_v43, 2  ;;  %v1318_v34 = vrot.slane %v2444_v43, 3 }
 0x162   :  { %v1321_v4 = vrot.slane %v1695_v49, 3  ;;  %v1434_v5 = vrot.slane %v1695_v49, 4  ;;  %v1317_v41 = vrot.slane %v2439_v39, 3 }
 0x163   :  { %1389 = vrot.lane.b32.xlu0 %v1350_v54, %s1910_s22 }
 0x164   :  { %v1118_v11 = vpop.f32.mrb[4].mxu0  ;;  %v1435_v13 = vsel %vm1432_vm9, %v1433_v53, %v1434_v5  ;;  %v1322_v14 = vsel %vm1316_vm8, %v1320_v0, %v1321_v4  ;;  %v1319_v45 = vsel %vm1316_vm8, %v1317_v41, %v1318_v34 }
 0x165   :  { %v2472_v17 = vadd.f32 %v1118_v11, %v2362_v55  ;;  %v1120_v18 = vpop.f32.mrb[5].mxu0  ;;  %1216 = vrot.lane.b32.xlu1 %v1197_v12, %s1909_s2  ;;  %v1182_v55 = vsel %vm1179_vm7, %v1180_v19, %v1181_v3 }
 0x166   :  { %v1697_v2 = vadd.f32 %v1120_v18, %v2364_v56  ;;  %v1122_v23 = vpop.f32.mrb[6].mxu0  ;;  %v1259_v56 = vsel %vm576_vm3, %v1256_v16, %v1258_v6 }
 0x167   :  { %v2484_v25 = vadd.f32 %v1122_v23, %v2366_v57  ;;  %v1124_v26 = vpop.f32.mrb[7].mxu0  ;;  %1202 = vrot.lane.b32.xlu0 %v1182_v55, %s1909_s2  ;;  %v1242_v57 = vrot.slane %v2439_v39, 2  ;;  %v1200_v23 = vrot.slane %v2434_v10, 1  ;;  %v1357_v55 = vrot.slane %v2434_v10, 3 }
 0x168   :  { %v1325_v21 = vrot.slane %v1697_v2, 3  ;;  %v1436_v28 = vrot.slane %v1697_v2, 4  ;;  %v1699_v31 = vadd.f32 %v1124_v26, %v2368_v58  ;;  %v1260_v2 = vrot.slane %v2428_v30, 2 }
 0x169   :  { %1278 = vrot.lane.b32.xlu1 %v1259_v56, %s1911_s3  ;;  %v1244_v58 = vsel %vm576_vm3, %v1242_v57, %v1243_v27  ;;  %v1353_v26 = vrot.slane %v2428_v30, 3  ;;  %v1323_v57 = vrot.slane %v2472_v17, 3 }
 0x16a   :  { %v1329_v9 = vrot.slane %v1699_v31, 3  ;;  %v1438_v32 = vrot.slane %v1699_v31, 4  ;;  %v1326_v33 = vsel %vm1316_vm8, %v1321_v4, %v1325_v21  ;;  %v2505_v35 = vsel %vm1432_vm9, %v1434_v5, %v1436_v28 }
 0x16b   :  { %1264 = vrot.lane.b32.xlu0 %v1244_v58, %s1911_s3  ;;  %v1198_v5 = vrot.slane %v2428_v30, 1  ;;  %v1185_v31 = vrot.slane %v2484_v25, 1 }
 0x16c   :  { %v1128_v36 = vpop.f32.mrb[8].mxu0  ;;  %v2509_v16 = vsel %vm1316_vm8, %v1325_v21, %v1329_v9  ;;  %v2512_v37 = vsel %vm1432_vm9, %v1436_v28, %v1438_v32  ;;  %v1358_v21 = vsel %vm1316_vm8, %v1353_v26, %v1357_v55  ;;  %v1183_v28 = vrot.slane %v2472_v17, 1 }
 0x16d   :  { %v2515_v38 = vadd.f32 %v1128_v36, %v2370_v1  ;;  %v1130_v40 = vpop.f32.mrb[9].mxu0  ;;  %1391 = vrot.lane.b32.xlu1 %v2423_v8, %s1910_s22 }
 0x16e   :  { %v1701_v42 = vadd.f32 %v1130_v40, %v2372_v59  ;;  %v1132_v44 = vpop.f32.mrb[10].mxu0 }
 0x16f   :  { %v2522_v47 = vadd.f32 %v1132_v44, %v2374_v60  ;;  %v1134_v49 = vpop.f32.mrb[11].mxu0  ;;  %1361 = vrot.lane.b32.xlu0 %v1319_v45, %s1910_s22  ;;  %v1331_v8 = vrot.slane %v2515_v38, 3  ;;  %v1187_v60 = vrot.slane %v2515_v38, 1  ;;  %v1249_v36 = vrot.slane %v2515_v38, 2 }
 0x170   :  { %v1333_v50 = vrot.slane %v1701_v42, 3  ;;  %v1440_v1 = vrot.slane %v1701_v42, 4  ;;  %v1703_v63 = vadd.f32 %v1134_v49, %v2376_v61 }
 0x171   :  { %v1189_v59 = vrot.slane %v2522_v47, 1  ;;  %v1335_v0 = vrot.slane %v2522_v47, 3  ;;  %1469 = vrot.lane.b32.xlu1 %v2426_v29, %s1912_s23  ;;  %v1199_v29 = vsel %vm1179_vm7, %v1196_v51, %v1198_v5  ;;  %v1201_v51 = vsel %vm1179_vm7, %v1198_v5, %v1200_v23 }
 0x172   :  { %v1337_v53 = vrot.slane %v1703_v63, 3  ;;  %v1442_v4 = vrot.slane %v1703_v63, 4  ;;  %v1334_v61 = vsel %vm1316_vm8, %v1329_v9, %v1333_v50  ;;  %v1441_v12 = vsel %vm1432_vm9, %v1438_v32, %v1440_v1 }
 0x173   :  { %v1190_v54 = vsel %vm1179_vm7, %v1187_v60, %v1189_v59  ;;  %v1336_v11 = vsel %vm1316_vm8, %v1331_v8, %v1335_v0  ;;  %1455 = vrot.lane.b32.xlu0 %v1435_v13, %s1912_s23  ;;  %v1261_v13 = vsel %vm576_vm3, %v1258_v6, %v1260_v2  ;;  %v1324_v9 = vsel %vm1316_vm8, %v1318_v34, %v1323_v57 }
 0x174   :  { %v1443_v18 = vsel %vm1432_vm9, %v1440_v1, %v1442_v4  ;;  %v1338_v19 = vsel %vm1316_vm8, %v1333_v50, %v1337_v53  ;;  %v1188_v34 = vsel %vm1179_vm7, %v1185_v31, %v1187_v60 }
 0x175   :  { %1363 = vrot.lane.b32.xlu1 %v1322_v14, %s1910_s22  ;;  %v1262_v14 = vrot.slane %v2434_v10, 2  ;;  %v1184_v10 = vsel %vm1179_vm7, %v1181_v3, %v1183_v28  ;;  %v1247_v3 = vrot.slane %v2484_v25, 2 }
 0x177   :  { %1218 = vrot.lane.b32.xlu0 %v1199_v29, %s1909_s2  ;;  %v1263_v6 = vsel %vm576_vm3, %v1260_v2, %v1262_v14  ;;  %v2632_v29 = vld [vmem:[%s2709_s4] ss:$0 sm:$0xff] }
 0x179   :  { %1395 = vrot.lane.b32.xlu1 %v2452_v52, %s1910_s22  ;;  %v1354_v52 = vsel %vm1316_vm8, %v1349_v48, %v1353_v26  ;;  %v1245_v48 = vrot.slane %v2472_v17, 2 }
 0x17b   :  { %1280 = vrot.lane.b32.xlu0 %v1261_v13, %s1911_s3  ;;  %v1246_v56 = vsel %vm576_vm3, %v1243_v27, %v1245_v48  ;;  %v1248_v32 = vsel %vm576_vm3, %v1245_v48, %v1247_v3  ;;  %v1327_v27 = vrot.slane %v2484_v25, 3 }
 0x17d   :  { %1220 = vrot.lane.b32.xlu1 %v1201_v51, %s1909_s2  ;;  %v1332_v58 = vsel %vm1316_vm8, %v1327_v27, %v1331_v8  ;;  %v2639_v51 = vld [vmem:[%s2710_s5] sm:$0xff] }
 0x17f   :  { %1393 = vrot.lane.b32.xlu0 %v1354_v52, %s1910_s22  ;;  %v2644_v52 = vld [vmem:[%s2710_s5 + $0x10] sm:$0xff] }
 0x181   :  { %1282 = vrot.lane.b32.xlu1 %v1263_v6, %s1911_s3 }
 0x183   :  { %1397 = vrot.lane.b32.xlu0 %v1358_v21, %s1910_s22 }
 0x185   :  { %1399 = vrot.lane.b32.xlu1 %v2469_v15, %s1910_s22  ;;  %v1186_v15 = vsel %vm1179_vm7, %v1183_v28, %v1185_v31 }
 0x187   :  { %1204 = vrot.lane.b32.xlu0 %v1184_v10, %s1909_s2 }
 0x189   :  { %1367 = vrot.lane.b32.xlu1 %v1326_v33, %s1910_s22  ;;  %v1328_v33 = vsel %vm1316_vm8, %v1323_v57, %v1327_v27 }
 0x18b   :  { %1266 = vrot.lane.b32.xlu0 %v1246_v56, %s1911_s3 }
 0x18d   :  { %1206 = vrot.lane.b32.xlu1 %v1186_v15, %s1909_s2 }
 0x18f   :  { %1365 = vrot.lane.b32.xlu0 %v1324_v9, %s1910_s22 }
 0x191   :  { %1268 = vrot.lane.b32.xlu1 %v1248_v32, %s1911_s3 }
 0x193   :  { %1457 = vrot.lane.b32.xlu0 %v2505_v35, %s1912_s23  ;;  %v1251_v35 = vrot.slane %v2522_v47, 2 }
 0x195   :  { %1371 = vrot.lane.b32.xlu1 %v2509_v16, %s1910_s22  ;;  %v1250_v16 = vsel %vm576_vm3, %v1247_v3, %v1249_v36 }
 0x197   :  { %1369 = vrot.lane.b32.xlu0 %v1328_v33, %s1910_s22 }
 0x199   :  { %1459 = vrot.lane.b32.xlu1 %v2512_v37, %s1912_s23  ;;  %v1252_v37 = vsel %vm576_vm3, %v1249_v36, %v1251_v35 }
 0x19b   :  { %1373 = vrot.lane.b32.xlu0 %v1332_v58, %s1910_s22 }
 0x19d   :  { %1208 = vrot.lane.b32.xlu1 %v1188_v34, %s1909_s2 }
 0x19f   :  { %1210 = vrot.lane.b32.xlu0 %v1190_v54, %s1909_s2 }
 0x1a1   :  { %1270 = vrot.lane.b32.xlu1 %v1250_v16, %s1911_s3 }
 0x1a3   :  { %1272 = vrot.lane.b32.xlu0 %v1252_v37, %s1911_s3 }
 0x1a5   :  { %1375 = vrot.lane.b32.xlu1 %v1334_v61, %s1910_s22 }
 0x1a7   :  { %1377 = vrot.lane.b32.xlu0 %v1336_v11, %s1910_s22 }
 0x1a9   :  { %1461 = vrot.lane.b32.xlu1 %v1441_v12, %s1912_s23 }
 0x1ab   :  { %1463 = vrot.lane.b32.xlu0 %v1443_v18, %s1912_s23 }
 0x1ad   :  { %1379 = vrot.lane.b32.xlu1 %v1338_v19, %s1910_s22 }
 0x1af   :  { %1471 = vrot.lane.b32.xlu0 %v2476_v7, %s1912_s23 }
 0x1b1   :  { %1473 = vrot.lane.b32.xlu1 %v2479_v22, %s1912_s23 }
 0x1c1   :  { %v1213_v40 = vpop.permute.xlu0 %1212 }
 0x1c2   :  { %v1384_v41 = vpop.permute.xlu1 %1383  ;;  %v1237_v42 = vadd.f32 %v2384_v20, %v1213_v40 }
 0x1c5   :  { %v1275_v44 = vpop.permute.xlu0 %1274 }
 0x1c6   :  { %v1299_v47 = vadd.f32 %v1275_v44, %v1237_v42 }
 0x1c7   :  { %v1215_v49 = vpop.permute.xlu1 %1214 }
 0x1c8   :  { %v1238_v50 = vadd.f32 %v2386_v24, %v1215_v49 }
 0x1c9   :  { %v1382_v45 = vpop.permute.xlu0 %1381 }
 0x1ca   :  { %v1407_v1 = vsel %vm1401_vm10, %v1382_v45, %v1384_v41 }
 0x1cb   :  { %v1277_v63 = vpop.permute.xlu1 %1276  ;;  %v1427_v59 = vadd.f32 %v1407_v1, %v1299_v47 }
 0x1cc   :  { %v1300_v0 = vadd.f32 %v1277_v63, %v1238_v50 }
 0x1cd   :  { %v1466_v7 = vpop.permute.xlu0 %1465 }
 0x1ce   :  { %v1490_v8 = vadd.f32 %v1466_v7, %v1427_v59 }
 0x1cf   :  { %v1388_v60 = vpop.permute.xlu1 %1387 }
 0x1d0   :  { %v1507_v14 = vadd.f32 %v2632_v29, %v1490_v8 }
 0x1d1   :  { %v1386_v22 = vpop.permute.xlu0 %1385 }
 0x1d2   :  { %v1408_v53 = vsel %vm1401_vm10, %v1386_v22, %v1388_v60  ;;  %v1522_v21 = vadd.f32 %v2639_v51, %v1507_v14 }
 0x1d3   :  { %v1428_v4 = vadd.f32 %v1408_v53, %v1300_v0  ;;  %v1468_v20 = vpop.permute.xlu1 %1467 }
 0x1d4   :  { %v2650_v56 = vsel %vm1527_vm11, %v1522_v21, -inf }
 0x1d5   :  { %v2626_v5 = vadd.f32 %v1468_v20, %v1428_v4  ;;  %v1390_v54 = vpop.permute.xlu0 %1389 }
 0x1d7   :  { %v1217_v61 = vpop.permute.xlu1 %1216 }
 0x1d8   :  { %v1239_v24 = vadd.f32 %v2395_v46, %v1217_v61 }
 0x1d9   :  { %v1203_v11 = vpop.permute.xlu0 %1202 }
 0x1da   :  { %v1232_v0 = vadd.f32 %v2439_v39, %v1203_v11 }
 0x1db   :  { %v1279_v12 = vpop.permute.xlu1 %1278 }
 0x1dc   :  { %v1301_v18 = vadd.f32 %v1279_v12, %v1239_v24 }
 0x1dd   :  { %v1265_v19 = vpop.permute.xlu0 %1264 }
 0x1de   :  { %v1294_v22 = vadd.f32 %v1265_v19, %v1232_v0 }
 0x1df   :  { %v1392_v2 = vpop.permute.xlu1 %1391 }
 0x1e0   :  { %v1409_v23 = vsel %vm1401_vm10, %v1390_v54, %v1392_v2 }
 0x1e1   :  { %v1362_v13 = vpop.permute.xlu0 %1361  ;;  %v1429_v26 = vadd.f32 %v1409_v23, %v1301_v18 }
 0x1e3   :  { %v1470_v46 = vpop.permute.xlu1 %1469 }
 0x1e4   :  { %v1492_v55 = vadd.f32 %v1470_v46, %v1429_v26 }
 0x1e5   :  { %v1456_v6 = vpop.permute.xlu0 %1455 }
 0x1e6   :  { %v1509_v28 = vadd.f32 %v2632_v29, %v1492_v55 }
 0x1e7   :  { %v1364_v10 = vpop.permute.xlu1 %1363 }
 0x1e8   :  { %v1524_v48 = vadd.f32 %v2644_v52, %v1509_v28  ;;  %v1402_v60 = vsel %vm1401_vm10, %v1362_v13, %v1364_v10 }
 0x1e9   :  { %v1219_v31 = vpop.permute.xlu0 %1218  ;;  %v1422_v24 = vadd.f32 %v1402_v60, %v1294_v22 }
 0x1ea   :  { %v2653_v57 = vsel %vm1527_vm11, %v1524_v48, -inf }
 0x1eb   :  { %v1546_v15 = vmax.f32 %v2650_v56, %v2653_v57  ;;  %v1396_v3 = vpop.permute.xlu1 %1395  ;;  %v1485_v13 = vadd.f32 %v1456_v6, %v1422_v24 }
 0x1ed   :  { %v1281_v9 = vpop.permute.xlu0 %1280 }
 0x1ef   :  { %v1221_v32 = vpop.permute.xlu1 %1220 }
 0x1f0   :  { %v1241_v48 = vadd.f32 %v2428_v30, %v1221_v32 }
 0x1f1   :  { %v1394_v27 = vpop.permute.xlu0 %1393 }
 0x1f3   :  { %v1283_v33 = vpop.permute.xlu1 %1282 }
 0x1f5   :  { %v1398_v58 = vpop.permute.xlu0 %1397 }
 0x1f7   :  { %v1400_v34 = vpop.permute.xlu1 %1399 }
 0x1f9   :  { %v1205_v36 = vpop.permute.xlu0 %1204 }
 0x1fa   :  { %v1233_v53 = vadd.f32 %v2444_v43, %v1205_v36  ;;  %v1240_v43 = vadd.f32 %v2399_v62, %v1219_v31  ;;  %v1502_v36 = vadd.f32 %v2632_v29, %v1485_v13  ;;  %v1303_v31 = vadd.f32 %v1283_v33, %v1241_v48  ;;  %v1513_v33 = vld [vmem:[%s2710_s5 + $0x8] sm:$0xff] }
 0x1fb   :  { %v1368_v35 = vpop.permute.xlu1 %1367 }
 0x1fc   :  { %v1302_v10 = vadd.f32 %v1281_v9, %v1240_v43 }
 0x1fd   :  { %v1267_v16 = vpop.permute.xlu0 %1266 }
 0x1ff   :  { %v1207_v37 = vpop.permute.xlu1 %1206 }
 0x200   :  { %v1234_v1 = vadd.f32 %v2472_v17, %v1207_v37  ;;  %v1295_v17 = vadd.f32 %v1267_v16, %v1233_v53 }
 0x201   :  { %v1366_v40 = vpop.permute.xlu0 %1365 }
 0x202   :  { %v1403_v61 = vsel %vm1401_vm10, %v1366_v40, %v1368_v35  ;;  %v1411_v35 = vsel %vm1401_vm10, %v1398_v58, %v1400_v34  ;;  %v1508_v58 = vadd.f32 %v2632_v29, %v2626_v5 }
 0x203   :  { %v1269_v41 = vpop.permute.xlu1 %1268  ;;  %v1423_v39 = vadd.f32 %v1403_v61, %v1295_v17  ;;  %v1431_v40 = vadd.f32 %v1411_v35, %v1303_v31 }
 0x204   :  { %v1296_v7 = vadd.f32 %v1269_v41, %v1234_v1  ;;  %v1517_v41 = vadd.f32 %v2639_v51, %v1502_v36 }
 0x205   :  { %v1458_v42 = vpop.permute.xlu0 %1457 }
 0x206   :  { %v1486_v46 = vadd.f32 %v1458_v42, %v1423_v39  ;;  %v1528_v51 = vsel %vm1527_vm11, %v1517_v41, -inf }
 0x207   :  { %v1372_v44 = vpop.permute.xlu1 %1371 }
 0x208   :  { %v1503_v9 = vadd.f32 %v2632_v29, %v1486_v46 }
 0x209   :  { %v1370_v47 = vpop.permute.xlu0 %1369 }
 0x20a   :  { %v1404_v59 = vsel %vm1401_vm10, %v1370_v47, %v1372_v44 }
 0x20b   :  { %v1460_v49 = vpop.permute.xlu1 %1459  ;;  %v1424_v4 = vadd.f32 %v1404_v59, %v1296_v7 }
 0x20d   :  { %v1374_v45 = vpop.permute.xlu0 %1373  ;;  %v1487_v11 = vadd.f32 %v1460_v49, %v1424_v4 }
 0x20f   :  { %v1209_v50 = vpop.permute.xlu1 %1208  ;;  %v1504_v55 = vadd.f32 %v2632_v29, %v1487_v11 }
 0x210   :  { %v1235_v20 = vadd.f32 %v2484_v25, %v1209_v50  ;;  %v1410_v25 = vsel %vm1401_vm10, %v1394_v27, %v1396_v3  ;;  %v1515_v3 = vld [vmem:[%s2710_s5 + $0x18] sm:$0xff]  ;;  %v1518_v50 = vadd.f32 %v1513_v33, %v1503_v9 }
 0x211   :  { %v1211_v63 = vpop.permute.xlu0 %1210  ;;  %v1519_v30 = vadd.f32 %v2644_v52, %v1504_v55  ;;  %v1516_v52 = vld [vmem:[%s2710_s5 + $0x20] sm:$0xff] }
 0x212   :  { %v1236_v21 = vadd.f32 %v2515_v38, %v1211_v63  ;;  %v1430_v38 = vadd.f32 %v1410_v25, %v1302_v10  ;;  %v1523_v63 = vadd.f32 %v1513_v33, %v1508_v58  ;;  %v1529_v4 = vsel %vm1527_vm11, %v1518_v50, -inf }
 0x213   :  { %v1271_v8 = vpop.permute.xlu1 %1270  ;;  %v1530_v5 = vsel %vm1527_vm11, %v1519_v30, -inf }
 0x214   :  { %v1297_v12 = vadd.f32 %v1271_v8, %v1235_v20  ;;  %v1531_v60 = vmax.f32 %v1528_v51, %v1530_v5 }
 0x215   :  { %v1273_v54 = vpop.permute.xlu0 %1272 }
 0x216   :  { %v1298_v6 = vadd.f32 %v1273_v54, %v1236_v21  ;;  %v1544_v54 = vsel %vm1527_vm11, %v1523_v63, -inf }
 0x217   :  { %v1376_v18 = vpop.permute.xlu1 %1375 }
 0x218   :  { %v1405_v2 = vsel %vm1401_vm10, %v1374_v45, %v1376_v18 }
 0x219   :  { %v1378_v23 = vpop.permute.xlu0 %1377  ;;  %v1425_v26 = vadd.f32 %v1405_v2, %v1297_v12 }
 0x21b   :  { %v1462_v19 = vpop.permute.xlu1 %1461 }
 0x21c   :  { %v1488_v14 = vadd.f32 %v1462_v19, %v1425_v26 }
 0x21d   :  { %v1464_v28 = vpop.permute.xlu0 %1463 }
 0x21e   :  { %v1505_v16 = vadd.f32 %v2632_v29, %v1488_v14 }
 0x21f   :  { %v1380_v62 = vpop.permute.xlu1 %1379 }
 0x220   :  { %v1406_v27 = vsel %vm1401_vm10, %v1378_v23, %v1380_v62  ;;  %v1520_v42 = vadd.f32 %v1515_v3, %v1505_v16 }
 0x221   :  { %v1426_v32 = vadd.f32 %v1406_v27, %v1298_v6  ;;  %v1472_v37 = vpop.permute.xlu0 %1471 }
 0x222   :  { %v1493_v34 = vadd.f32 %v1472_v37, %v1430_v38  ;;  %v1532_v7 = vsel %vm1527_vm11, %v1520_v42, -inf }
 0x223   :  { %v1489_v44 = vadd.f32 %v1464_v28, %v1426_v32  ;;  %v1474_v47 = vpop.permute.xlu1 %1473  ;;  %v1533_v61 = vmax.f32 %v1529_v4, %v1532_v7 }
 0x224   :  { %v1510_v49 = vadd.f32 %v2632_v29, %v1493_v34  ;;  %v1494_v45 = vadd.f32 %v1474_v47, %v1431_v40 }
 0x225   :  { %v1506_v1 = vadd.f32 %v2632_v29, %v1489_v44 }
 0x226   :  { %v1525_v59 = vadd.f32 %v1515_v3, %v1510_v49  ;;  %v1511_v0 = vadd.f32 %v2632_v29, %v1494_v45 }
 0x227   :  { %v1521_v8 = vadd.f32 %v1516_v52, %v1506_v1 }
 0x228   :  { %v1547_v22 = vsel %vm1527_vm11, %v1525_v59, -inf  ;;  %v1526_v53 = vadd.f32 %v1516_v52, %v1511_v0 }
 0x229   :  { %v1534_v20 = vsel %vm1527_vm11, %v1521_v8, -inf  ;;  %v1548_v29 = vmax.f32 %v1544_v54, %v1547_v22 }
 0x22a   :  { %v1535_v24 = vmax.f32 %v1531_v60, %v1534_v20  ;;  %v1549_v17 = vsel %vm1527_vm11, %v1526_v53, -inf }
 0x22b   :  { %v1550_v12 = vmax.f32 %v1546_v15, %v1549_v17 }
 0x22c   :  { %v1536_v18 = vmax.f32 %v1535_v24, %v1533_v61 }
 0x22d   :  { %v1551_v2 = vmax.f32 %v1550_v12, %v1548_v29 }
 0x22e   :  { %v1537_v39 = vrot.slane %v1536_v18, 4 }
 0x22f   :  { %v1552_v11 = vrot.slane %v1551_v2, 4 }
 0x230   :  { %v1538_v23 = vmax.f32 %v1536_v18, %v1537_v39 }
 0x231   :  { %v1553_v26 = vmax.f32 %v1551_v2, %v1552_v11 }
 0x232   :  { %v1539_v13 = vrot.slane %v1538_v23, 2 }
 0x233   :  { %v1554_v19 = vrot.slane %v1553_v26, 2 }
 0x234   :  { %v1540_v43 = vmax.f32 %v1538_v23, %v1539_v13 }
 0x235   :  { %v1555_v14 = vmax.f32 %v1553_v26, %v1554_v19 }
 0x236   :  { %v1541_v25 = vrot.slane %v1540_v43, 1 }
 0x237   :  { %v1556_v46 = vrot.slane %v1555_v14, 1 }
 0x238   :  { %v1542_v55 = vmax.f32 %v1540_v43, %v1541_v25 }
 0x239   :  { %v1557_v21 = vmax.f32 %v1555_v14, %v1556_v46 }
 0x23a   :  { %v1558_v28 = vmax.f32 %v1542_v55, 0.0 }
 0x23b   :  { %v1559_v10 = vmax.f32 %v1557_v21, 0.0 }
 0x23d   :  { %v1563_v56 = vsel %vm1562_vm12, %v1559_v10, %v1558_v28 }
 0x23e   :  { %1566 = vst.msk [vmem:[%s2711_s6] sm:$0x3] %vm1565_vm13, %v1563_v56 }

</bundles_post_ra>
